<compile_context>
chip_gen: v5e
topology: v5e:2x2
jax: 0.10.0
libtpu: 0.0.40
codegen_flags: <defaults>
</compile_context>

<pallas_src>
import functools
import numpy as np
import jax
import jax.numpy as jnp
from jax.experimental import pallas as pl
from jax.experimental.pallas import tpu as pltpu

# ---------------- configuration (small, consistent with the module) ----------------
B = 2
NT = 8            # text sequence length
NI = 16           # image sequence length
DIM_TEXT = 32
DIM_IMAGE = 32
DIM_JOINT_ATTN = 32   # accepted by JointAttention but unused in its projections
DIM_COND = 8
DIM_HEAD = 16
HEADS = 4
DIM_INNER = DIM_HEAD * HEADS
FF_MULT = 4

# split order follows MMDiTBlock.__init__: 8 gammas (4 text, 4 image), 4 betas (2 text, 2 image)
COND_DIMS = (DIM_TEXT,) * 4 + (DIM_IMAGE,) * 4 + (DIM_TEXT,) * 2 + (DIM_IMAGE,) * 2


# ------------------------------- fused Pallas kernel ---------------------------------

def _mmdit_fused_kernel(text_ref, image_ref, tcond_ref,
                        cond_w_ref, cond_b_ref,
                        wqkv_t_ref, wqkv_i_ref,
                        wout_t_ref, wout_i_ref,
                        ff_w1_ref, ff_b1_ref, ff_w2_ref, ff_b2_ref,
                        text_out_ref, image_out_ref, *, heads, dim_head):
    f32 = jnp.float32
    Bb, Nt, Dt = text_ref.shape
    _, Ni, Di = image_ref.shape
    H, Dh = heads, dim_head
    dim_inner = H * Dh
    scale = Dh ** -0.5

    # ---- adaLN conditioning: SiLU -> Linear -> static in-kernel split --------------
    tc = tcond_ref[...].astype(f32)
    cond = jnp.dot(jax.nn.silu(tc), cond_w_ref[...],
                   preferred_element_type=f32) + cond_b_ref[...]          # (B, sum_cond)
    offs = [0] + [int(v) for v in np.cumsum(COND_DIMS)]
    chunks = [cond[:, offs[i]:offs[i + 1]] for i in range(len(COND_DIMS))]
    (t_pre_attn_g, t_post_attn_g, t_pre_ff_g, _t_post_ff_g,
     i_pre_attn_g, i_post_attn_g, i_pre_ff_g, i_post_ff_g,
     t_pre_attn_b, t_pre_ff_b, i_pre_attn_b, i_pre_ff_b) = chunks

    def ln_mod(x, g, b):           # LayerNorm (no affine, eps=1e-5) + adaLN modulation
        mu = jnp.mean(x, axis=-1, keepdims=True)
        xc = x - mu
        var = jnp.mean(xc * xc, axis=-1, keepdims=True)
        xn = xc * jax.lax.rsqrt(var + 1e-5)
        return xn * g[:, None, :] + b[:, None, :]

    text_in = text_ref[...].astype(f32)                                   # (B, Nt, Dt)
    image_in = image_ref[...].astype(f32)                                 # (B, Ni, Di)

    # ---- pre-attention LN + modulation ----------------------------------------------
    t_mod = ln_mod(text_in, t_pre_attn_g, t_pre_attn_b)
    i_mod = ln_mod(image_in, i_pre_attn_g, i_pre_attn_b)

    # ---- joint attention: per-modality QKV projections, heads stay lane-packed ------
    qkv_t = jnp.dot(t_mod.reshape(Bb * Nt, Dt), wqkv_t_ref[...],
                    preferred_element_type=f32)                           # (B*Nt, 3*H*Dh)
    qkv_i = jnp.dot(i_mod.reshape(Bb * Ni, Di), wqkv_i_ref[...],
                    preferred_element_type=f32)                           # (B*Ni, 3*H*Dh)

    # column layout is (qkv, h, d); fold the softmax scale into q once here
    q_t = qkv_t[:, :dim_inner] * scale
    k_t = qkv_t[:, dim_inner:2 * dim_inner]
    v_t = qkv_t[:, 2 * dim_inner:]
    q_i = qkv_i[:, :dim_inner] * scale
    k_i = qkv_i[:, dim_inner:2 * dim_inner]
    v_i = qkv_i[:, 2 * dim_inner:]

    nt_dims = (((1,), (1,)), ((), ()))        # contract last dims: q @ k^T without .T
    o_text_rows, o_image_rows = [], []
    for b in range(Bb):
        # pack the joint sequence [text || image] for this batch element
        q_b = jnp.concatenate([q_t[b * Nt:(b + 1) * Nt], q_i[b * Ni:(b + 1) * Ni]], axis=0)
        k_b = jnp.concatenate([k_t[b * Nt:(b + 1) * Nt], k_i[b * Ni:(b + 1) * Ni]], axis=0)
        v_b = jnp.concatenate([v_t[b * Nt:(b + 1) * Nt], v_i[b * Ni:(b + 1) * Ni]], axis=0)
        heads_out = []
        for h in range(H):
            sl = slice(h * Dh, (h + 1) * Dh)
            s = jax.lax.dot_general(q_b[:, sl], k_b[:, sl], nt_dims,
                                    preferred_element_type=f32)           # (N, N)
            s = s - jnp.max(s, axis=-1, keepdims=True)
            p = jnp.exp(s)
            inv = pl.reciprocal(jnp.sum(p, axis=-1, keepdims=True), approx=True)
            heads_out.append(jnp.dot(p, v_b[:, sl], preferred_element_type=f32) * inv)
        o_b = jnp.concatenate(heads_out, axis=1)                          # (N, H*Dh) lane-dense
        o_text_rows.append(o_b[:Nt])
        o_image_rows.append(o_b[Nt:])

    o_text = jnp.concatenate(o_text_rows, axis=0)                         # (B*Nt, H*Dh)
    o_image = jnp.concatenate(o_image_rows, axis=0)                       # (B*Ni, H*Dh)

    # ---- output projections + post-attention gate + residual (fused epilogue) -------
    t_attn = jnp.dot(o_text, wout_t_ref[...],
                     preferred_element_type=f32).reshape(Bb, Nt, Dt)
    i_attn = jnp.dot(o_image, wout_i_ref[...],
                     preferred_element_type=f32).reshape(Bb, Ni, Di)
    text = t_attn * t_post_attn_g[:, None, :] + text_in
    image = i_attn * i_post_attn_g[:, None, :] + image_in

    # ---- pre-FF LN + modulation (module reuses the affine-free attn layernorms) -----
    t_ff_in = ln_mod(text, t_pre_ff_g, t_pre_ff_b)
    i_ff_in = ln_mod(image, i_pre_ff_g, i_pre_ff_b)

    # skip_feedforward_text_tokens=True: returned text tokens are the LN+modulated ones
    text_out_ref[...] = t_ff_in.astype(text_out_ref.dtype)

    # ---- image FeedForward (Linear -> GELU -> Linear) + gate + residual -------------
    # TODO(synk): PyTorch nn.GELU() is exact (erf); tanh-approx kept for robust Mosaic lowering.
    hdn = jnp.dot(i_ff_in.reshape(Bb * Ni, Di), ff_w1_ref[...],
                  preferred_element_type=f32) + ff_b1_ref[...]
    hdn = jax.nn.gelu(hdn, approximate=True)
    i_ff = (jnp.dot(hdn, ff_w2_ref[...], preferred_element_type=f32)
            + ff_b2_ref[...]).reshape(Bb, Ni, Di)
    image_out_ref[...] = (i_ff * i_post_ff_g[:, None, :] + image).astype(image_out_ref.dtype)


def mmdit_block_forward(params, text_tokens, image_tokens, time_cond):
    """Single fused pallas_call: whole-array VMEM blocks, no grid, no inter-kernel HBM traffic."""
    Bb, Nt, Dt = text_tokens.shape
    _, Ni, Di = image_tokens.shape
    sum_cond = sum(COND_DIMS)

    kern = functools.partial(_mmdit_fused_kernel, heads=HEADS, dim_head=DIM_HEAD)
    vmem = pl.BlockSpec(memory_space=pltpu.MemorySpace.VMEM)

    return pl.pallas_call(
        kern,
        out_shape=(jax.ShapeDtypeStruct((Bb, Nt, Dt), jnp.float32),
                   jax.ShapeDtypeStruct((Bb, Ni, Di), jnp.float32)),
        in_specs=[vmem] * 13,
        out_specs=(vmem, vmem),
    )(text_tokens, image_tokens, time_cond,
      params['cond_w'], params['cond_b'].reshape(1, sum_cond),
      params['wqkv_t'], params['wqkv_i'],
      params['wout_t'], params['wout_i'],
      params['ff_w1'], params['ff_b1'].reshape(1, -1),
      params['ff_w2'], params['ff_b2'].reshape(1, -1))


# ------------------------------- parameters ------------------------------------------

def init_params(key):
    ks = jax.random.split(key, 10)
    sum_cond = sum(COND_DIMS)
    n_gamma = sum(COND_DIMS[:8])

    def w(k, shape, fan_in):
        return jax.random.normal(k, shape, jnp.float32) / np.sqrt(fan_in)

    return dict(
        # JointAttention projections (stored transposed: x @ W)
        wqkv_t=w(ks[0], (DIM_TEXT, 3 * DIM_INNER), DIM_TEXT),
        wqkv_i=w(ks[1], (DIM_IMAGE, 3 * DIM_INNER), DIM_IMAGE),
        wout_t=w(ks[2], (DIM_INNER, DIM_TEXT), DIM_INNER),
        wout_i=w(ks[3], (DIM_INNER, DIM_IMAGE), DIM_INNER),
        # to_cond linear (module zero-inits; small deterministic perturbation keeps the
        # adaLN path non-trivial while preserving gamma~1 / beta~0 scale)
        cond_w=0.05 * jax.random.normal(ks[4], (DIM_COND, sum_cond), jnp.float32),
        cond_b=jnp.concatenate([jnp.ones((n_gamma,), jnp.float32),
                                jnp.zeros((sum_cond - n_gamma,), jnp.float32)])
               + 0.05 * jax.random.normal(ks[5], (sum_cond,), jnp.float32),
        # image FeedForward (mult=4). text_ff exists in the module but is unused
        # because skip_feedforward_text_tokens defaults to True.
        ff_w1=w(ks[6], (DIM_IMAGE, FF_MULT * DIM_IMAGE), DIM_IMAGE),
        ff_b1=0.01 * jax.random.normal(ks[7], (FF_MULT * DIM_IMAGE,), jnp.float32),
        ff_w2=w(ks[8], (FF_MULT * DIM_IMAGE, DIM_IMAGE), FF_MULT * DIM_IMAGE),
        ff_b2=0.01 * jax.random.normal(ks[9], (DIM_IMAGE,), jnp.float32),
    )


# ------------------------------- pure-JAX reference ----------------------------------

def reference_forward(params, text_tokens, image_tokens, time_cond):
    Bb, Nt, _ = text_tokens.shape
    _, Ni, _ = image_tokens.shape
    H, Dh = HEADS, DIM_HEAD
    hp = jax.lax.Precision.HIGHEST

    cond = jnp.dot(jax.nn.silu(time_cond), params['cond_w'], precision=hp) + params['cond_b']
    cond = cond[:, None, :]
    splits = list(np.cumsum(COND_DIMS)[:-1])
    (tpag, tpog, tpfg, tpofg, ipag, ipog, ipfg, ipofg,
     tpab, tpfb, ipab, ipfb) = jnp.split(cond, splits, axis=-1)

    def ln(x):
        mu = jnp.mean(x, -1, keepdims=True)
        var = jnp.mean((x - mu) ** 2, -1, keepdims=True)
        return (x - mu) * jax.lax.rsqrt(var + 1e-5)

    t_res, i_res = text_tokens, image_tokens
    t = ln(text_tokens) * tpag + tpab
    im = ln(image_tokens) * ipag + ipab

    def qkv_f(x, w, n):
        qkv = jnp.dot(x, w, precision=hp).reshape(Bb, n, 3, H, Dh)
        return jnp.transpose(qkv, (2, 0, 3, 1, 4))

    qkv = jnp.concatenate([qkv_f(t, params['wqkv_t'], Nt),
                           qkv_f(im, params['wqkv_i'], Ni)], axis=3)
    q, k, v = qkv[0], qkv[1], qkv[2]
    s = jnp.einsum('bhqd,bhkd->bhqk', q, k, precision=hp) * (Dh ** -0.5)
    p = jax.nn.softmax(s, axis=-1)
    o = jnp.einsum('bhqk,bhkd->bhqd', p, v, precision=hp)
    o = o.transpose(0, 2, 1, 3).reshape(Bb, Nt + Ni, H * Dh)
    t_attn = jnp.dot(o[:, :Nt], params['wout_t'], precision=hp)
    i_attn = jnp.dot(o[:, Nt:], params['wout_i'], precision=hp)

    text = t_attn * tpog + t_res
    image = i_attn * ipog + i_res
    t_res, i_res = text, image
    t = ln(text) * tpfg + tpfb
    im = ln(image) * ipfg + ipfb

    h = jax.nn.gelu(jnp.dot(im, params['ff_w1'], precision=hp) + params['ff_b1'],
                    approximate=True)
    i_ff = jnp.dot(h, params['ff_w2'], precision=hp) + params['ff_b2']
    image = i_ff * ipofg + i_res
    return t, image


# ------------------------------------ main --------------------------------------------

if __name__ == "__main__":
    key = jax.random.PRNGKey(0)
    kp, kt, ki, kc = jax.random.split(key, 4)
    params = init_params(kp)
    text_tokens = jax.random.normal(kt, (B, NT, DIM_TEXT), jnp.float32)
    image_tokens = jax.random.normal(ki, (B, NI, DIM_IMAGE), jnp.float32)
    time_cond = jax.random.normal(kc, (B, DIM_COND), jnp.float32)

    text_out, image_out = jax.jit(mmdit_block_forward)(params, text_tokens, image_tokens, time_cond)
    jax.block_until_ready((text_out, image_out))

    ref_t, ref_i = reference_forward(params, text_tokens, image_tokens, time_cond)
    np.testing.assert_allclose(np.asarray(text_out), np.asarray(ref_t), rtol=2e-2, atol=2e-2)
    np.testing.assert_allclose(np.asarray(image_out), np.asarray(ref_i), rtol=2e-2, atol=2e-2)

    print("KERNEL_OK")
</pallas_src>

<mosaic_0001>
module attributes {stable_mosaic.version = 11 : i64} {
  func.func @_mmdit_fused_kernel(%arg0: memref<2x8x32xf32, #tpu.memory_space<vmem>>, %arg1: memref<2x16x32xf32, #tpu.memory_space<vmem>>, %arg2: memref<2x8xf32, #tpu.memory_space<vmem>>, %arg3: memref<8x384xf32, #tpu.memory_space<vmem>>, %arg4: memref<1x384xf32, #tpu.memory_space<vmem>>, %arg5: memref<32x192xf32, #tpu.memory_space<vmem>>, %arg6: memref<32x192xf32, #tpu.memory_space<vmem>>, %arg7: memref<64x32xf32, #tpu.memory_space<vmem>>, %arg8: memref<64x32xf32, #tpu.memory_space<vmem>>, %arg9: memref<32x128xf32, #tpu.memory_space<vmem>>, %arg10: memref<1x128xf32, #tpu.memory_space<vmem>>, %arg11: memref<128x32xf32, #tpu.memory_space<vmem>>, %arg12: memref<1x32xf32, #tpu.memory_space<vmem>>, %arg13: memref<2x8x32xf32, #tpu.memory_space<vmem>>, %arg14: memref<2x16x32xf32, #tpu.memory_space<vmem>>) attributes {dimension_semantics = [], scalar_prefetch = 0 : i64, scratch_operands = 0 : i64, tpu.core_type = #tpu.core_type<tc>} {
    %c0 = arith.constant 0 : index
    %c0_0 = arith.constant 0 : index
    %0 = vector.load %arg2[%c0, %c0_0] : memref<2x8xf32, #tpu.memory_space<vmem>>, vector<2x8xf32>
    %1 = arith.negf %0 : vector<2x8xf32>
    %2 = math.exp %1 : vector<2x8xf32>
    %cst = arith.constant 1.000000e+00 : f32
    %3 = vector.broadcast %cst : f32 to vector<2x8xf32>
    %4 = arith.addf %3, %2 : vector<2x8xf32>
    %5 = arith.divf %3, %4 : vector<2x8xf32>
    %6 = arith.mulf %0, %5 : vector<2x8xf32>
    %c0_1 = arith.constant 0 : index
    %c0_2 = arith.constant 0 : index
    %7 = vector.load %arg3[%c0_1, %c0_2] : memref<8x384xf32, #tpu.memory_space<vmem>>, vector<8x384xf32>
    %cst_3 = arith.constant dense<0.000000e+00> : vector<2x384xf32>
    %8 = tpu.matmul %6, %7, %cst_3 {dimension_numbers = #tpu.dot_dimension_numbers<[1], [0], [0], [1], [0, 0, 1, 1], [], []>} : vector<2x8xf32>, vector<8x384xf32>, vector<2x384xf32> -> vector<2x384xf32>
    %c0_4 = arith.constant 0 : index
    %c0_5 = arith.constant 0 : index
    %9 = vector.load %arg4[%c0_4, %c0_5] : memref<1x384xf32, #tpu.memory_space<vmem>>, vector<1x384xf32>
    %10 = vector.broadcast %9 : vector<1x384xf32> to vector<2x384xf32>
    %11 = arith.addf %8, %10 : vector<2x384xf32>
    %12 = vector.extract_strided_slice %11 {offsets = [0, 0], sizes = [2, 32], strides = [1, 1]} : vector<2x384xf32> to vector<2x32xf32>
    %13 = vector.extract_strided_slice %11 {offsets = [0, 32], sizes = [2, 32], strides = [1, 1]} : vector<2x384xf32> to vector<2x32xf32>
    %14 = vector.extract_strided_slice %11 {offsets = [0, 64], sizes = [2, 32], strides = [1, 1]} : vector<2x384xf32> to vector<2x32xf32>
    %15 = vector.extract_strided_slice %11 {offsets = [0, 128], sizes = [2, 32], strides = [1, 1]} : vector<2x384xf32> to vector<2x32xf32>
    %16 = vector.extract_strided_slice %11 {offsets = [0, 160], sizes = [2, 32], strides = [1, 1]} : vector<2x384xf32> to vector<2x32xf32>
    %17 = vector.extract_strided_slice %11 {offsets = [0, 192], sizes = [2, 32], strides = [1, 1]} : vector<2x384xf32> to vector<2x32xf32>
    %18 = vector.extract_strided_slice %11 {offsets = [0, 224], sizes = [2, 32], strides = [1, 1]} : vector<2x384xf32> to vector<2x32xf32>
    %19 = vector.extract_strided_slice %11 {offsets = [0, 256], sizes = [2, 32], strides = [1, 1]} : vector<2x384xf32> to vector<2x32xf32>
    %20 = vector.extract_strided_slice %11 {offsets = [0, 288], sizes = [2, 32], strides = [1, 1]} : vector<2x384xf32> to vector<2x32xf32>
    %21 = vector.extract_strided_slice %11 {offsets = [0, 320], sizes = [2, 32], strides = [1, 1]} : vector<2x384xf32> to vector<2x32xf32>
    %22 = vector.extract_strided_slice %11 {offsets = [0, 352], sizes = [2, 32], strides = [1, 1]} : vector<2x384xf32> to vector<2x32xf32>
    %c0_6 = arith.constant 0 : index
    %c0_7 = arith.constant 0 : index
    %c0_8 = arith.constant 0 : index
    %23 = vector.load %arg0[%c0_6, %c0_7, %c0_8] : memref<2x8x32xf32, #tpu.memory_space<vmem>>, vector<2x8x32xf32>
    %c0_9 = arith.constant 0 : index
    %c0_10 = arith.constant 0 : index
    %c0_11 = arith.constant 0 : index
    %24 = vector.load %arg1[%c0_9, %c0_10, %c0_11] : memref<2x16x32xf32, #tpu.memory_space<vmem>>, vector<2x16x32xf32>
    %cst_12 = arith.constant dense<0.000000e+00> : vector<2x8xf32>
    %25 = vector.multi_reduction <add>, %23, %cst_12 [2] : vector<2x8x32xf32> to vector<2x8xf32>
    %26 = vector.shape_cast %25 : vector<2x8xf32> to vector<2x8x1xf32>
    %cst_13 = arith.constant 3.200000e+01 : f32
    %27 = vector.broadcast %cst_13 : f32 to vector<2x8x1xf32>
    %28 = arith.divf %26, %27 : vector<2x8x1xf32>
    %29 = vector.broadcast %28 : vector<2x8x1xf32> to vector<2x8x32xf32>
    %30 = arith.subf %23, %29 : vector<2x8x32xf32>
    %31 = arith.mulf %30, %30 : vector<2x8x32xf32>
    %cst_14 = arith.constant dense<0.000000e+00> : vector<2x8xf32>
    %32 = vector.multi_reduction <add>, %31, %cst_14 [2] : vector<2x8x32xf32> to vector<2x8xf32>
    %33 = vector.shape_cast %32 : vector<2x8xf32> to vector<2x8x1xf32>
    %cst_15 = arith.constant 3.200000e+01 : f32
    %34 = vector.broadcast %cst_15 : f32 to vector<2x8x1xf32>
    %35 = arith.divf %33, %34 : vector<2x8x1xf32>
    %cst_16 = arith.constant 9.99999974E-6 : f32
    %36 = vector.broadcast %cst_16 : f32 to vector<2x8x1xf32>
    %37 = arith.addf %35, %36 : vector<2x8x1xf32>
    %38 = math.rsqrt %37 : vector<2x8x1xf32>
    %39 = vector.broadcast %38 : vector<2x8x1xf32> to vector<2x8x32xf32>
    %40 = arith.mulf %30, %39 : vector<2x8x32xf32>
    %41 = vector.shape_cast %12 : vector<2x32xf32> to vector<2x1x32xf32>
    %42 = vector.broadcast %41 : vector<2x1x32xf32> to vector<2x8x32xf32>
    %43 = arith.mulf %40, %42 : vector<2x8x32xf32>
    %44 = vector.shape_cast %19 : vector<2x32xf32> to vector<2x1x32xf32>
    %45 = vector.broadcast %44 : vector<2x1x32xf32> to vector<2x8x32xf32>
    %46 = arith.addf %43, %45 : vector<2x8x32xf32>
    %cst_17 = arith.constant dense<0.000000e+00> : vector<2x16xf32>
    %47 = vector.multi_reduction <add>, %24, %cst_17 [2] : vector<2x16x32xf32> to vector<2x16xf32>
    %48 = vector.shape_cast %47 : vector<2x16xf32> to vector<2x16x1xf32>
    %cst_18 = arith.constant 3.200000e+01 : f32
    %49 = vector.broadcast %cst_18 : f32 to vector<2x16x1xf32>
    %50 = arith.divf %48, %49 : vector<2x16x1xf32>
    %51 = vector.broadcast %50 : vector<2x16x1xf32> to vector<2x16x32xf32>
    %52 = arith.subf %24, %51 : vector<2x16x32xf32>
    %53 = arith.mulf %52, %52 : vector<2x16x32xf32>
    %cst_19 = arith.constant dense<0.000000e+00> : vector<2x16xf32>
    %54 = vector.multi_reduction <add>, %53, %cst_19 [2] : vector<2x16x32xf32> to vector<2x16xf32>
    %55 = vector.shape_cast %54 : vector<2x16xf32> to vector<2x16x1xf32>
    %cst_20 = arith.constant 3.200000e+01 : f32
    %56 = vector.broadcast %cst_20 : f32 to vector<2x16x1xf32>
    %57 = arith.divf %55, %56 : vector<2x16x1xf32>
    %cst_21 = arith.constant 9.99999974E-6 : f32
    %58 = vector.broadcast %cst_21 : f32 to vector<2x16x1xf32>
    %59 = arith.addf %57, %58 : vector<2x16x1xf32>
    %60 = math.rsqrt %59 : vector<2x16x1xf32>
    %61 = vector.broadcast %60 : vector<2x16x1xf32> to vector<2x16x32xf32>
    %62 = arith.mulf %52, %61 : vector<2x16x32xf32>
    %63 = vector.shape_cast %15 : vector<2x32xf32> to vector<2x1x32xf32>
    %64 = vector.broadcast %63 : vector<2x1x32xf32> to vector<2x16x32xf32>
    %65 = arith.mulf %62, %64 : vector<2x16x32xf32>
    %66 = vector.shape_cast %21 : vector<2x32xf32> to vector<2x1x32xf32>
    %67 = vector.broadcast %66 : vector<2x1x32xf32> to vector<2x16x32xf32>
    %68 = arith.addf %65, %67 : vector<2x16x32xf32>
    %69 = vector.shape_cast %46 : vector<2x8x32xf32> to vector<16x32xf32>
    %c0_22 = arith.constant 0 : index
    %c0_23 = arith.constant 0 : index
    %70 = vector.load %arg5[%c0_22, %c0_23] : memref<32x192xf32, #tpu.memory_space<vmem>>, vector<32x192xf32>
    %cst_24 = arith.constant dense<0.000000e+00> : vector<16x192xf32>
    %71 = tpu.matmul %69, %70, %cst_24 {dimension_numbers = #tpu.dot_dimension_numbers<[1], [0], [0], [1], [0, 0, 1, 1], [], []>} : vector<16x32xf32>, vector<32x192xf32>, vector<16x192xf32> -> vector<16x192xf32>
    %72 = vector.shape_cast %68 : vector<2x16x32xf32> to vector<32x32xf32>
    %c0_25 = arith.constant 0 : index
    %c0_26 = arith.constant 0 : index
    %73 = vector.load %arg6[%c0_25, %c0_26] : memref<32x192xf32, #tpu.memory_space<vmem>>, vector<32x192xf32>
    %cst_27 = arith.constant dense<0.000000e+00> : vector<32x192xf32>
    %74 = tpu.matmul %72, %73, %cst_27 {dimension_numbers = #tpu.dot_dimension_numbers<[1], [0], [0], [1], [0, 0, 1, 1], [], []>} : vector<32x32xf32>, vector<32x192xf32>, vector<32x192xf32> -> vector<32x192xf32>
    %75 = vector.extract_strided_slice %71 {offsets = [0, 0], sizes = [16, 64], strides = [1, 1]} : vector<16x192xf32> to vector<16x64xf32>
    %cst_28 = arith.constant 2.500000e-01 : f32
    %76 = vector.broadcast %cst_28 : f32 to vector<16x64xf32>
    %77 = arith.mulf %75, %76 : vector<16x64xf32>
    %78 = vector.extract_strided_slice %71 {offsets = [0, 64], sizes = [16, 64], strides = [1, 1]} : vector<16x192xf32> to vector<16x64xf32>
    %79 = vector.extract_strided_slice %71 {offsets = [0, 128], sizes = [16, 64], strides = [1, 1]} : vector<16x192xf32> to vector<16x64xf32>
    %80 = vector.extract_strided_slice %74 {offsets = [0, 0], sizes = [32, 64], strides = [1, 1]} : vector<32x192xf32> to vector<32x64xf32>
    %cst_29 = arith.constant 2.500000e-01 : f32
    %81 = vector.broadcast %cst_29 : f32 to vector<32x64xf32>
    %82 = arith.mulf %80, %81 : vector<32x64xf32>
    %83 = vector.extract_strided_slice %74 {offsets = [0, 64], sizes = [32, 64], strides = [1, 1]} : vector<32x192xf32> to vector<32x64xf32>
    %84 = vector.extract_strided_slice %74 {offsets = [0, 128], sizes = [32, 64], strides = [1, 1]} : vector<32x192xf32> to vector<32x64xf32>
    %85 = vector.extract_strided_slice %77 {offsets = [0, 0], sizes = [8, 64], strides = [1, 1]} : vector<16x64xf32> to vector<8x64xf32>
    %86 = vector.extract_strided_slice %82 {offsets = [0, 0], sizes = [16, 64], strides = [1, 1]} : vector<32x64xf32> to vector<16x64xf32>
    %87 = tpu.concatenate %85, %86 in 0 : vector<8x64xf32>, vector<16x64xf32> -> vector<24x64xf32>
    %88 = vector.extract_strided_slice %78 {offsets = [0, 0], sizes = [8, 64], strides = [1, 1]} : vector<16x64xf32> to vector<8x64xf32>
    %89 = vector.extract_strided_slice %83 {offsets = [0, 0], sizes = [16, 64], strides = [1, 1]} : vector<32x64xf32> to vector<16x64xf32>
    %90 = tpu.concatenate %88, %89 in 0 : vector<8x64xf32>, vector<16x64xf32> -> vector<24x64xf32>
    %91 = vector.extract_strided_slice %79 {offsets = [0, 0], sizes = [8, 64], strides = [1, 1]} : vector<16x64xf32> to vector<8x64xf32>
    %92 = vector.extract_strided_slice %84 {offsets = [0, 0], sizes = [16, 64], strides = [1, 1]} : vector<32x64xf32> to vector<16x64xf32>
    %93 = tpu.concatenate %91, %92 in 0 : vector<8x64xf32>, vector<16x64xf32> -> vector<24x64xf32>
    %94 = vector.extract_strided_slice %87 {offsets = [0, 0], sizes = [24, 16], strides = [1, 1]} : vector<24x64xf32> to vector<24x16xf32>
    %95 = vector.extract_strided_slice %90 {offsets = [0, 0], sizes = [24, 16], strides = [1, 1]} : vector<24x64xf32> to vector<24x16xf32>
    %cst_30 = arith.constant dense<0.000000e+00> : vector<24x24xf32>
    %96 = tpu.matmul %94, %95, %cst_30 {dimension_numbers = #tpu.dot_dimension_numbers<[1], [1], [0], [0], [0, 0, 1, 0], [], []>} : vector<24x16xf32>, vector<24x16xf32>, vector<24x24xf32> -> vector<24x24xf32>
    %cst_31 = arith.constant dense<0xFF800000> : vector<24xf32>
    %97 = vector.multi_reduction <maximumf>, %96, %cst_31 [1] : vector<24x24xf32> to vector<24xf32>
    %98 = vector.shape_cast %97 : vector<24xf32> to vector<24x1xf32>
    %99 = vector.broadcast %98 : vector<24x1xf32> to vector<24x24xf32>
    %100 = arith.subf %96, %99 : vector<24x24xf32>
    %101 = math.exp %100 : vector<24x24xf32>
    %cst_32 = arith.constant dense<0.000000e+00> : vector<24xf32>
    %102 = vector.multi_reduction <add>, %101, %cst_32 [1] : vector<24x24xf32> to vector<24xf32>
    %103 = vector.shape_cast %102 : vector<24xf32> to vector<24x1xf32>
    %104 = tpu.reciprocal %103 {approx = true} : vector<24x1xf32> -> vector<24x1xf32>
    %105 = vector.extract_strided_slice %93 {offsets = [0, 0], sizes = [24, 16], strides = [1, 1]} : vector<24x64xf32> to vector<24x16xf32>
    %cst_33 = arith.constant dense<0.000000e+00> : vector<24x16xf32>
    %106 = tpu.matmul %101, %105, %cst_33 {dimension_numbers = #tpu.dot_dimension_numbers<[1], [0], [0], [1], [0, 0, 1, 1], [], []>} : vector<24x24xf32>, vector<24x16xf32>, vector<24x16xf32> -> vector<24x16xf32>
    %107 = vector.broadcast %104 : vector<24x1xf32> to vector<24x16xf32>
    %108 = arith.mulf %106, %107 : vector<24x16xf32>
    %109 = vector.extract_strided_slice %87 {offsets = [0, 16], sizes = [24, 16], strides = [1, 1]} : vector<24x64xf32> to vector<24x16xf32>
    %110 = vector.extract_strided_slice %90 {offsets = [0, 16], sizes = [24, 16], strides = [1, 1]} : vector<24x64xf32> to vector<24x16xf32>
    %cst_34 = arith.constant dense<0.000000e+00> : vector<24x24xf32>
    %111 = tpu.matmul %109, %110, %cst_34 {dimension_numbers = #tpu.dot_dimension_numbers<[1], [1], [0], [0], [0, 0, 1, 0], [], []>} : vector<24x16xf32>, vector<24x16xf32>, vector<24x24xf32> -> vector<24x24xf32>
    %cst_35 = arith.constant dense<0xFF800000> : vector<24xf32>
    %112 = vector.multi_reduction <maximumf>, %111, %cst_35 [1] : vector<24x24xf32> to vector<24xf32>
    %113 = vector.shape_cast %112 : vector<24xf32> to vector<24x1xf32>
    %114 = vector.broadcast %113 : vector<24x1xf32> to vector<24x24xf32>
    %115 = arith.subf %111, %114 : vector<24x24xf32>
    %116 = math.exp %115 : vector<24x24xf32>
    %cst_36 = arith.constant dense<0.000000e+00> : vector<24xf32>
    %117 = vector.multi_reduction <add>, %116, %cst_36 [1] : vector<24x24xf32> to vector<24xf32>
    %118 = vector.shape_cast %117 : vector<24xf32> to vector<24x1xf32>
    %119 = tpu.reciprocal %118 {approx = true} : vector<24x1xf32> -> vector<24x1xf32>
    %120 = vector.extract_strided_slice %93 {offsets = [0, 16], sizes = [24, 16], strides = [1, 1]} : vector<24x64xf32> to vector<24x16xf32>
    %cst_37 = arith.constant dense<0.000000e+00> : vector<24x16xf32>
    %121 = tpu.matmul %116, %120, %cst_37 {dimension_numbers = #tpu.dot_dimension_numbers<[1], [0], [0], [1], [0, 0, 1, 1], [], []>} : vector<24x24xf32>, vector<24x16xf32>, vector<24x16xf32> -> vector<24x16xf32>
    %122 = vector.broadcast %119 : vector<24x1xf32> to vector<24x16xf32>
    %123 = arith.mulf %121, %122 : vector<24x16xf32>
    %124 = vector.extract_strided_slice %87 {offsets = [0, 32], sizes = [24, 16], strides = [1, 1]} : vector<24x64xf32> to vector<24x16xf32>
    %125 = vector.extract_strided_slice %90 {offsets = [0, 32], sizes = [24, 16], strides = [1, 1]} : vector<24x64xf32> to vector<24x16xf32>
    %cst_38 = arith.constant dense<0.000000e+00> : vector<24x24xf32>
    %126 = tpu.matmul %124, %125, %cst_38 {dimension_numbers = #tpu.dot_dimension_numbers<[1], [1], [0], [0], [0, 0, 1, 0], [], []>} : vector<24x16xf32>, vector<24x16xf32>, vector<24x24xf32> -> vector<24x24xf32>
    %cst_39 = arith.constant dense<0xFF800000> : vector<24xf32>
    %127 = vector.multi_reduction <maximumf>, %126, %cst_39 [1] : vector<24x24xf32> to vector<24xf32>
    %128 = vector.shape_cast %127 : vector<24xf32> to vector<24x1xf32>
    %129 = vector.broadcast %128 : vector<24x1xf32> to vector<24x24xf32>
    %130 = arith.subf %126, %129 : vector<24x24xf32>
    %131 = math.exp %130 : vector<24x24xf32>
    %cst_40 = arith.constant dense<0.000000e+00> : vector<24xf32>
    %132 = vector.multi_reduction <add>, %131, %cst_40 [1] : vector<24x24xf32> to vector<24xf32>
    %133 = vector.shape_cast %132 : vector<24xf32> to vector<24x1xf32>
    %134 = tpu.reciprocal %133 {approx = true} : vector<24x1xf32> -> vector<24x1xf32>
    %135 = vector.extract_strided_slice %93 {offsets = [0, 32], sizes = [24, 16], strides = [1, 1]} : vector<24x64xf32> to vector<24x16xf32>
    %cst_41 = arith.constant dense<0.000000e+00> : vector<24x16xf32>
    %136 = tpu.matmul %131, %135, %cst_41 {dimension_numbers = #tpu.dot_dimension_numbers<[1], [0], [0], [1], [0, 0, 1, 1], [], []>} : vector<24x24xf32>, vector<24x16xf32>, vector<24x16xf32> -> vector<24x16xf32>
    %137 = vector.broadcast %134 : vector<24x1xf32> to vector<24x16xf32>
    %138 = arith.mulf %136, %137 : vector<24x16xf32>
    %139 = vector.extract_strided_slice %87 {offsets = [0, 48], sizes = [24, 16], strides = [1, 1]} : vector<24x64xf32> to vector<24x16xf32>
    %140 = vector.extract_strided_slice %90 {offsets = [0, 48], sizes = [24, 16], strides = [1, 1]} : vector<24x64xf32> to vector<24x16xf32>
    %cst_42 = arith.constant dense<0.000000e+00> : vector<24x24xf32>
    %141 = tpu.matmul %139, %140, %cst_42 {dimension_numbers = #tpu.dot_dimension_numbers<[1], [1], [0], [0], [0, 0, 1, 0], [], []>} : vector<24x16xf32>, vector<24x16xf32>, vector<24x24xf32> -> vector<24x24xf32>
    %cst_43 = arith.constant dense<0xFF800000> : vector<24xf32>
    %142 = vector.multi_reduction <maximumf>, %141, %cst_43 [1] : vector<24x24xf32> to vector<24xf32>
    %143 = vector.shape_cast %142 : vector<24xf32> to vector<24x1xf32>
    %144 = vector.broadcast %143 : vector<24x1xf32> to vector<24x24xf32>
    %145 = arith.subf %141, %144 : vector<24x24xf32>
    %146 = math.exp %145 : vector<24x24xf32>
    %cst_44 = arith.constant dense<0.000000e+00> : vector<24xf32>
    %147 = vector.multi_reduction <add>, %146, %cst_44 [1] : vector<24x24xf32> to vector<24xf32>
    %148 = vector.shape_cast %147 : vector<24xf32> to vector<24x1xf32>
    %149 = tpu.reciprocal %148 {approx = true} : vector<24x1xf32> -> vector<24x1xf32>
    %150 = vector.extract_strided_slice %93 {offsets = [0, 48], sizes = [24, 16], strides = [1, 1]} : vector<24x64xf32> to vector<24x16xf32>
    %cst_45 = arith.constant dense<0.000000e+00> : vector<24x16xf32>
    %151 = tpu.matmul %146, %150, %cst_45 {dimension_numbers = #tpu.dot_dimension_numbers<[1], [0], [0], [1], [0, 0, 1, 1], [], []>} : vector<24x24xf32>, vector<24x16xf32>, vector<24x16xf32> -> vector<24x16xf32>
    %152 = vector.broadcast %149 : vector<24x1xf32> to vector<24x16xf32>
    %153 = arith.mulf %151, %152 : vector<24x16xf32>
    %154 = tpu.concatenate %108, %123, %138, %153 in 1 : vector<24x16xf32>, vector<24x16xf32>, vector<24x16xf32>, vector<24x16xf32> -> vector<24x64xf32>
    %155 = vector.extract_strided_slice %154 {offsets = [0, 0], sizes = [8, 64], strides = [1, 1]} : vector<24x64xf32> to vector<8x64xf32>
    %156 = vector.extract_strided_slice %154 {offsets = [8, 0], sizes = [16, 64], strides = [1, 1]} : vector<24x64xf32> to vector<16x64xf32>
    %157 = vector.extract_strided_slice %77 {offsets = [8, 0], sizes = [8, 64], strides = [1, 1]} : vector<16x64xf32> to vector<8x64xf32>
    %158 = vector.extract_strided_slice %82 {offsets = [16, 0], sizes = [16, 64], strides = [1, 1]} : vector<32x64xf32> to vector<16x64xf32>
    %159 = tpu.concatenate %157, %158 in 0 : vector<8x64xf32>, vector<16x64xf32> -> vector<24x64xf32>
    %160 = vector.extract_strided_slice %78 {offsets = [8, 0], sizes = [8, 64], strides = [1, 1]} : vector<16x64xf32> to vector<8x64xf32>
    %161 = vector.extract_strided_slice %83 {offsets = [16, 0], sizes = [16, 64], strides = [1, 1]} : vector<32x64xf32> to vector<16x64xf32>
    %162 = tpu.concatenate %160, %161 in 0 : vector<8x64xf32>, vector<16x64xf32> -> vector<24x64xf32>
    %163 = vector.extract_strided_slice %79 {offsets = [8, 0], sizes = [8, 64], strides = [1, 1]} : vector<16x64xf32> to vector<8x64xf32>
    %164 = vector.extract_strided_slice %84 {offsets = [16, 0], sizes = [16, 64], strides = [1, 1]} : vector<32x64xf32> to vector<16x64xf32>
    %165 = tpu.concatenate %163, %164 in 0 : vector<8x64xf32>, vector<16x64xf32> -> vector<24x64xf32>
    %166 = vector.extract_strided_slice %159 {offsets = [0, 0], sizes = [24, 16], strides = [1, 1]} : vector<24x64xf32> to vector<24x16xf32>
    %167 = vector.extract_strided_slice %162 {offsets = [0, 0], sizes = [24, 16], strides = [1, 1]} : vector<24x64xf32> to vector<24x16xf32>
    %cst_46 = arith.constant dense<0.000000e+00> : vector<24x24xf32>
    %168 = tpu.matmul %166, %167, %cst_46 {dimension_numbers = #tpu.dot_dimension_numbers<[1], [1], [0], [0], [0, 0, 1, 0], [], []>} : vector<24x16xf32>, vector<24x16xf32>, vector<24x24xf32> -> vector<24x24xf32>
    %cst_47 = arith.constant dense<0xFF800000> : vector<24xf32>
    %169 = vector.multi_reduction <maximumf>, %168, %cst_47 [1] : vector<24x24xf32> to vector<24xf32>
    %170 = vector.shape_cast %169 : vector<24xf32> to vector<24x1xf32>
    %171 = vector.broadcast %170 : vector<24x1xf32> to vector<24x24xf32>
    %172 = arith.subf %168, %171 : vector<24x24xf32>
    %173 = math.exp %172 : vector<24x24xf32>
    %cst_48 = arith.constant dense<0.000000e+00> : vector<24xf32>
    %174 = vector.multi_reduction <add>, %173, %cst_48 [1] : vector<24x24xf32> to vector<24xf32>
    %175 = vector.shape_cast %174 : vector<24xf32> to vector<24x1xf32>
    %176 = tpu.reciprocal %175 {approx = true} : vector<24x1xf32> -> vector<24x1xf32>
    %177 = vector.extract_strided_slice %165 {offsets = [0, 0], sizes = [24, 16], strides = [1, 1]} : vector<24x64xf32> to vector<24x16xf32>
    %cst_49 = arith.constant dense<0.000000e+00> : vector<24x16xf32>
    %178 = tpu.matmul %173, %177, %cst_49 {dimension_numbers = #tpu.dot_dimension_numbers<[1], [0], [0], [1], [0, 0, 1, 1], [], []>} : vector<24x24xf32>, vector<24x16xf32>, vector<24x16xf32> -> vector<24x16xf32>
    %179 = vector.broadcast %176 : vector<24x1xf32> to vector<24x16xf32>
    %180 = arith.mulf %178, %179 : vector<24x16xf32>
    %181 = vector.extract_strided_slice %159 {offsets = [0, 16], sizes = [24, 16], strides = [1, 1]} : vector<24x64xf32> to vector<24x16xf32>
    %182 = vector.extract_strided_slice %162 {offsets = [0, 16], sizes = [24, 16], strides = [1, 1]} : vector<24x64xf32> to vector<24x16xf32>
    %cst_50 = arith.constant dense<0.000000e+00> : vector<24x24xf32>
    %183 = tpu.matmul %181, %182, %cst_50 {dimension_numbers = #tpu.dot_dimension_numbers<[1], [1], [0], [0], [0, 0, 1, 0], [], []>} : vector<24x16xf32>, vector<24x16xf32>, vector<24x24xf32> -> vector<24x24xf32>
    %cst_51 = arith.constant dense<0xFF800000> : vector<24xf32>
    %184 = vector.multi_reduction <maximumf>, %183, %cst_51 [1] : vector<24x24xf32> to vector<24xf32>
    %185 = vector.shape_cast %184 : vector<24xf32> to vector<24x1xf32>
    %186 = vector.broadcast %185 : vector<24x1xf32> to vector<24x24xf32>
    %187 = arith.subf %183, %186 : vector<24x24xf32>
    %188 = math.exp %187 : vector<24x24xf32>
    %cst_52 = arith.constant dense<0.000000e+00> : vector<24xf32>
    %189 = vector.multi_reduction <add>, %188, %cst_52 [1] : vector<24x24xf32> to vector<24xf32>
    %190 = vector.shape_cast %189 : vector<24xf32> to vector<24x1xf32>
    %191 = tpu.reciprocal %190 {approx = true} : vector<24x1xf32> -> vector<24x1xf32>
    %192 = vector.extract_strided_slice %165 {offsets = [0, 16], sizes = [24, 16], strides = [1, 1]} : vector<24x64xf32> to vector<24x16xf32>
    %cst_53 = arith.constant dense<0.000000e+00> : vector<24x16xf32>
    %193 = tpu.matmul %188, %192, %cst_53 {dimension_numbers = #tpu.dot_dimension_numbers<[1], [0], [0], [1], [0, 0, 1, 1], [], []>} : vector<24x24xf32>, vector<24x16xf32>, vector<24x16xf32> -> vector<24x16xf32>
    %194 = vector.broadcast %191 : vector<24x1xf32> to vector<24x16xf32>
    %195 = arith.mulf %193, %194 : vector<24x16xf32>
    %196 = vector.extract_strided_slice %159 {offsets = [0, 32], sizes = [24, 16], strides = [1, 1]} : vector<24x64xf32> to vector<24x16xf32>
    %197 = vector.extract_strided_slice %162 {offsets = [0, 32], sizes = [24, 16], strides = [1, 1]} : vector<24x64xf32> to vector<24x16xf32>
    %cst_54 = arith.constant dense<0.000000e+00> : vector<24x24xf32>
    %198 = tpu.matmul %196, %197, %cst_54 {dimension_numbers = #tpu.dot_dimension_numbers<[1], [1], [0], [0], [0, 0, 1, 0], [], []>} : vector<24x16xf32>, vector<24x16xf32>, vector<24x24xf32> -> vector<24x24xf32>
    %cst_55 = arith.constant dense<0xFF800000> : vector<24xf32>
    %199 = vector.multi_reduction <maximumf>, %198, %cst_55 [1] : vector<24x24xf32> to vector<24xf32>
    %200 = vector.shape_cast %199 : vector<24xf32> to vector<24x1xf32>
    %201 = vector.broadcast %200 : vector<24x1xf32> to vector<24x24xf32>
    %202 = arith.subf %198, %201 : vector<24x24xf32>
    %203 = math.exp %202 : vector<24x24xf32>
    %cst_56 = arith.constant dense<0.000000e+00> : vector<24xf32>
    %204 = vector.multi_reduction <add>, %203, %cst_56 [1] : vector<24x24xf32> to vector<24xf32>
    %205 = vector.shape_cast %204 : vector<24xf32> to vector<24x1xf32>
    %206 = tpu.reciprocal %205 {approx = true} : vector<24x1xf32> -> vector<24x1xf32>
    %207 = vector.extract_strided_slice %165 {offsets = [0, 32], sizes = [24, 16], strides = [1, 1]} : vector<24x64xf32> to vector<24x16xf32>
    %cst_57 = arith.constant dense<0.000000e+00> : vector<24x16xf32>
    %208 = tpu.matmul %203, %207, %cst_57 {dimension_numbers = #tpu.dot_dimension_numbers<[1], [0], [0], [1], [0, 0, 1, 1], [], []>} : vector<24x24xf32>, vector<24x16xf32>, vector<24x16xf32> -> vector<24x16xf32>
    %209 = vector.broadcast %206 : vector<24x1xf32> to vector<24x16xf32>
    %210 = arith.mulf %208, %209 : vector<24x16xf32>
    %211 = vector.extract_strided_slice %159 {offsets = [0, 48], sizes = [24, 16], strides = [1, 1]} : vector<24x64xf32> to vector<24x16xf32>
    %212 = vector.extract_strided_slice %162 {offsets = [0, 48], sizes = [24, 16], strides = [1, 1]} : vector<24x64xf32> to vector<24x16xf32>
    %cst_58 = arith.constant dense<0.000000e+00> : vector<24x24xf32>
    %213 = tpu.matmul %211, %212, %cst_58 {dimension_numbers = #tpu.dot_dimension_numbers<[1], [1], [0], [0], [0, 0, 1, 0], [], []>} : vector<24x16xf32>, vector<24x16xf32>, vector<24x24xf32> -> vector<24x24xf32>
    %cst_59 = arith.constant dense<0xFF800000> : vector<24xf32>
    %214 = vector.multi_reduction <maximumf>, %213, %cst_59 [1] : vector<24x24xf32> to vector<24xf32>
    %215 = vector.shape_cast %214 : vector<24xf32> to vector<24x1xf32>
    %216 = vector.broadcast %215 : vector<24x1xf32> to vector<24x24xf32>
    %217 = arith.subf %213, %216 : vector<24x24xf32>
    %218 = math.exp %217 : vector<24x24xf32>
    %cst_60 = arith.constant dense<0.000000e+00> : vector<24xf32>
    %219 = vector.multi_reduction <add>, %218, %cst_60 [1] : vector<24x24xf32> to vector<24xf32>
    %220 = vector.shape_cast %219 : vector<24xf32> to vector<24x1xf32>
    %221 = tpu.reciprocal %220 {approx = true} : vector<24x1xf32> -> vector<24x1xf32>
    %222 = vector.extract_strided_slice %165 {offsets = [0, 48], sizes = [24, 16], strides = [1, 1]} : vector<24x64xf32> to vector<24x16xf32>
    %cst_61 = arith.constant dense<0.000000e+00> : vector<24x16xf32>
    %223 = tpu.matmul %218, %222, %cst_61 {dimension_numbers = #tpu.dot_dimension_numbers<[1], [0], [0], [1], [0, 0, 1, 1], [], []>} : vector<24x24xf32>, vector<24x16xf32>, vector<24x16xf32> -> vector<24x16xf32>
    %224 = vector.broadcast %221 : vector<24x1xf32> to vector<24x16xf32>
    %225 = arith.mulf %223, %224 : vector<24x16xf32>
    %226 = tpu.concatenate %180, %195, %210, %225 in 1 : vector<24x16xf32>, vector<24x16xf32>, vector<24x16xf32>, vector<24x16xf32> -> vector<24x64xf32>
    %227 = vector.extract_strided_slice %226 {offsets = [0, 0], sizes = [8, 64], strides = [1, 1]} : vector<24x64xf32> to vector<8x64xf32>
    %228 = vector.extract_strided_slice %226 {offsets = [8, 0], sizes = [16, 64], strides = [1, 1]} : vector<24x64xf32> to vector<16x64xf32>
    %229 = tpu.concatenate %155, %227 in 0 : vector<8x64xf32>, vector<8x64xf32> -> vector<16x64xf32>
    %230 = tpu.concatenate %156, %228 in 0 : vector<16x64xf32>, vector<16x64xf32> -> vector<32x64xf32>
    %c0_62 = arith.constant 0 : index
    %c0_63 = arith.constant 0 : index
    %231 = vector.load %arg7[%c0_62, %c0_63] : memref<64x32xf32, #tpu.memory_space<vmem>>, vector<64x32xf32>
    %cst_64 = arith.constant dense<0.000000e+00> : vector<16x32xf32>
    %232 = tpu.matmul %229, %231, %cst_64 {dimension_numbers = #tpu.dot_dimension_numbers<[1], [0], [0], [1], [0, 0, 1, 1], [], []>} : vector<16x64xf32>, vector<64x32xf32>, vector<16x32xf32> -> vector<16x32xf32>
    %233 = vector.shape_cast %232 : vector<16x32xf32> to vector<2x8x32xf32>
    %c0_65 = arith.constant 0 : index
    %c0_66 = arith.constant 0 : index
    %234 = vector.load %arg8[%c0_65, %c0_66] : memref<64x32xf32, #tpu.memory_space<vmem>>, vector<64x32xf32>
    %cst_67 = arith.constant dense<0.000000e+00> : vector<32x32xf32>
    %235 = tpu.matmul %230, %234, %cst_67 {dimension_numbers = #tpu.dot_dimension_numbers<[1], [0], [0], [1], [0, 0, 1, 1], [], []>} : vector<32x64xf32>, vector<64x32xf32>, vector<32x32xf32> -> vector<32x32xf32>
    %236 = vector.shape_cast %235 : vector<32x32xf32> to vector<2x16x32xf32>
    %237 = vector.shape_cast %13 : vector<2x32xf32> to vector<2x1x32xf32>
    %238 = vector.broadcast %237 : vector<2x1x32xf32> to vector<2x8x32xf32>
    %239 = arith.mulf %233, %238 : vector<2x8x32xf32>
    %240 = arith.addf %239, %23 : vector<2x8x32xf32>
    %241 = vector.shape_cast %16 : vector<2x32xf32> to vector<2x1x32xf32>
    %242 = vector.broadcast %241 : vector<2x1x32xf32> to vector<2x16x32xf32>
    %243 = arith.mulf %236, %242 : vector<2x16x32xf32>
    %244 = arith.addf %243, %24 : vector<2x16x32xf32>
    %cst_68 = arith.constant dense<0.000000e+00> : vector<2x8xf32>
    %245 = vector.multi_reduction <add>, %240, %cst_68 [2] : vector<2x8x32xf32> to vector<2x8xf32>
    %246 = vector.shape_cast %245 : vector<2x8xf32> to vector<2x8x1xf32>
    %cst_69 = arith.constant 3.200000e+01 : f32
    %247 = vector.broadcast %cst_69 : f32 to vector<2x8x1xf32>
    %248 = arith.divf %246, %247 : vector<2x8x1xf32>
    %249 = vector.broadcast %248 : vector<2x8x1xf32> to vector<2x8x32xf32>
    %250 = arith.subf %240, %249 : vector<2x8x32xf32>
    %251 = arith.mulf %250, %250 : vector<2x8x32xf32>
    %cst_70 = arith.constant dense<0.000000e+00> : vector<2x8xf32>
    %252 = vector.multi_reduction <add>, %251, %cst_70 [2] : vector<2x8x32xf32> to vector<2x8xf32>
    %253 = vector.shape_cast %252 : vector<2x8xf32> to vector<2x8x1xf32>
    %cst_71 = arith.constant 3.200000e+01 : f32
    %254 = vector.broadcast %cst_71 : f32 to vector<2x8x1xf32>
    %255 = arith.divf %253, %254 : vector<2x8x1xf32>
    %cst_72 = arith.constant 9.99999974E-6 : f32
    %256 = vector.broadcast %cst_72 : f32 to vector<2x8x1xf32>
    %257 = arith.addf %255, %256 : vector<2x8x1xf32>
    %258 = math.rsqrt %257 : vector<2x8x1xf32>
    %259 = vector.broadcast %258 : vector<2x8x1xf32> to vector<2x8x32xf32>
    %260 = arith.mulf %250, %259 : vector<2x8x32xf32>
    %261 = vector.shape_cast %14 : vector<2x32xf32> to vector<2x1x32xf32>
    %262 = vector.broadcast %261 : vector<2x1x32xf32> to vector<2x8x32xf32>
    %263 = arith.mulf %260, %262 : vector<2x8x32xf32>
    %264 = vector.shape_cast %20 : vector<2x32xf32> to vector<2x1x32xf32>
    %265 = vector.broadcast %264 : vector<2x1x32xf32> to vector<2x8x32xf32>
    %266 = arith.addf %263, %265 : vector<2x8x32xf32>
    %cst_73 = arith.constant dense<0.000000e+00> : vector<2x16xf32>
    %267 = vector.multi_reduction <add>, %244, %cst_73 [2] : vector<2x16x32xf32> to vector<2x16xf32>
    %268 = vector.shape_cast %267 : vector<2x16xf32> to vector<2x16x1xf32>
    %cst_74 = arith.constant 3.200000e+01 : f32
    %269 = vector.broadcast %cst_74 : f32 to vector<2x16x1xf32>
    %270 = arith.divf %268, %269 : vector<2x16x1xf32>
    %271 = vector.broadcast %270 : vector<2x16x1xf32> to vector<2x16x32xf32>
    %272 = arith.subf %244, %271 : vector<2x16x32xf32>
    %273 = arith.mulf %272, %272 : vector<2x16x32xf32>
    %cst_75 = arith.constant dense<0.000000e+00> : vector<2x16xf32>
    %274 = vector.multi_reduction <add>, %273, %cst_75 [2] : vector<2x16x32xf32> to vector<2x16xf32>
    %275 = vector.shape_cast %274 : vector<2x16xf32> to vector<2x16x1xf32>
    %cst_76 = arith.constant 3.200000e+01 : f32
    %276 = vector.broadcast %cst_76 : f32 to vector<2x16x1xf32>
    %277 = arith.divf %275, %276 : vector<2x16x1xf32>
    %cst_77 = arith.constant 9.99999974E-6 : f32
    %278 = vector.broadcast %cst_77 : f32 to vector<2x16x1xf32>
    %279 = arith.addf %277, %278 : vector<2x16x1xf32>
    %280 = math.rsqrt %279 : vector<2x16x1xf32>
    %281 = vector.broadcast %280 : vector<2x16x1xf32> to vector<2x16x32xf32>
    %282 = arith.mulf %272, %281 : vector<2x16x32xf32>
    %283 = vector.shape_cast %17 : vector<2x32xf32> to vector<2x1x32xf32>
    %284 = vector.broadcast %283 : vector<2x1x32xf32> to vector<2x16x32xf32>
    %285 = arith.mulf %282, %284 : vector<2x16x32xf32>
    %286 = vector.shape_cast %22 : vector<2x32xf32> to vector<2x1x32xf32>
    %287 = vector.broadcast %286 : vector<2x1x32xf32> to vector<2x16x32xf32>
    %288 = arith.addf %285, %287 : vector<2x16x32xf32>
    %c0_78 = arith.constant 0 : index
    %c0_79 = arith.constant 0 : index
    %c0_80 = arith.constant 0 : index
    %289 = vector.load %arg13[%c0_78, %c0_79, %c0_80] : memref<2x8x32xf32, #tpu.memory_space<vmem>>, vector<2x8x32xf32>
    tpu.vector_store %arg13[%c0_78, %c0_79, %c0_80], %266 {strides = array<i32>} : memref<2x8x32xf32, #tpu.memory_space<vmem>>, vector<2x8x32xf32>,
    %290 = vector.shape_cast %288 : vector<2x16x32xf32> to vector<32x32xf32>
    %c0_81 = arith.constant 0 : index
    %c0_82 = arith.constant 0 : index
    %291 = vector.load %arg9[%c0_81, %c0_82] : memref<32x128xf32, #tpu.memory_space<vmem>>, vector<32x128xf32>
    %cst_83 = arith.constant dense<0.000000e+00> : vector<32x128xf32>
    %292 = tpu.matmul %290, %291, %cst_83 {dimension_numbers = #tpu.dot_dimension_numbers<[1], [0], [0], [1], [0, 0, 1, 1], [], []>} : vector<32x32xf32>, vector<32x128xf32>, vector<32x128xf32> -> vector<32x128xf32>
    %c0_84 = arith.constant 0 : index
    %c0_85 = arith.constant 0 : index
    %293 = vector.load %arg10[%c0_84, %c0_85] : memref<1x128xf32, #tpu.memory_space<vmem>>, vector<1x128xf32>
    %294 = vector.broadcast %293 : vector<1x128xf32> to vector<32x128xf32>
    %295 = arith.addf %292, %294 : vector<32x128xf32>
    %296 = arith.mulf %295, %295 : vector<32x128xf32>
    %297 = arith.mulf %295, %296 : vector<32x128xf32>
    %cst_86 = arith.constant 4.471500e-02 : f32
    %298 = vector.broadcast %cst_86 : f32 to vector<32x128xf32>
    %299 = arith.mulf %298, %297 : vector<32x128xf32>
    %300 = arith.addf %295, %299 : vector<32x128xf32>
    %cst_87 = arith.constant 0.797884583 : f32
    %301 = vector.broadcast %cst_87 : f32 to vector<32x128xf32>
    %302 = arith.mulf %301, %300 : vector<32x128xf32>
    %303 = math.tanh %302 : vector<32x128xf32>
    %cst_88 = arith.constant 1.000000e+00 : f32
    %304 = vector.broadcast %cst_88 : f32 to vector<32x128xf32>
    %305 = arith.addf %304, %303 : vector<32x128xf32>
    %cst_89 = arith.constant 5.000000e-01 : f32
    %306 = vector.broadcast %cst_89 : f32 to vector<32x128xf32>
    %307 = arith.mulf %306, %305 : vector<32x128xf32>
    %308 = arith.mulf %295, %307 : vector<32x128xf32>
    %c0_90 = arith.constant 0 : index
    %c0_91 = arith.constant 0 : index
    %309 = vector.load %arg11[%c0_90, %c0_91] : memref<128x32xf32, #tpu.memory_space<vmem>>, vector<128x32xf32>
    %cst_92 = arith.constant dense<0.000000e+00> : vector<32x32xf32>
    %310 = tpu.matmul %308, %309, %cst_92 {dimension_numbers = #tpu.dot_dimension_numbers<[1], [0], [0], [1], [0, 0, 1, 1], [], []>} : vector<32x128xf32>, vector<128x32xf32>, vector<32x32xf32> -> vector<32x32xf32>
    %c0_93 = arith.constant 0 : index
    %c0_94 = arith.constant 0 : index
    %311 = vector.load %arg12[%c0_93, %c0_94] : memref<1x32xf32, #tpu.memory_space<vmem>>, vector<1x32xf32>
    %312 = vector.broadcast %311 : vector<1x32xf32> to vector<32x32xf32>
    %313 = arith.addf %310, %312 : vector<32x32xf32>
    %314 = vector.shape_cast %313 : vector<32x32xf32> to vector<2x16x32xf32>
    %315 = vector.shape_cast %18 : vector<2x32xf32> to vector<2x1x32xf32>
    %316 = vector.broadcast %315 : vector<2x1x32xf32> to vector<2x16x32xf32>
    %317 = arith.mulf %314, %316 : vector<2x16x32xf32>
    %318 = arith.addf %317, %244 : vector<2x16x32xf32>
    %c0_95 = arith.constant 0 : index
    %c0_96 = arith.constant 0 : index
    %c0_97 = arith.constant 0 : index
    %319 = vector.load %arg14[%c0_95, %c0_96, %c0_97] : memref<2x16x32xf32, #tpu.memory_space<vmem>>, vector<2x16x32xf32>
    tpu.vector_store %arg14[%c0_95, %c0_96, %c0_97], %318 {strides = array<i32>} : memref<2x16x32xf32, #tpu.memory_space<vmem>>, vector<2x16x32xf32>,
    return
  }
}

</mosaic_0001>

<bundles_post_ra>
// kernel: mmdit_block_forward.1
= control target key start
LH: loop header
LB: loop body
LE: loop exit
PB: predicated region body
PF: predicated region fallthrough
CT: control target
= control target key end

     0   :  { %20 = vsyncpa [#allocation3], 0  ;;  %vm150_vm0 = vcmask 261120   ;;  %s3442_s0 = inlined_call_operand.vmem [shape: f32[2,8,32], index: 0, kind: input, shape index: {}]   ;;  %s3443_s1 = inlined_call_operand.vmem [shape: f32[2,16,32], index: 1, kind: input, shape index: {}]   ;;  %s3444_s2 = inlined_call_operand.vmem [shape: f32[2,8], index: 2, kind: input, shape index: {}]   ;;  %s3445_s3 = inlined_call_operand.vmem [shape: f32[8,384], index: 3, kind: input, shape index: {}]   ;;  %s3446_s4 = inlined_call_operand.vmem [shape: f32[1,384], index: 4, kind: input, shape index: {}]   ;;  %s3447_s5 = inlined_call_operand.vmem [shape: f32[32,192], index: 5, kind: input, shape index: {}]   ;;  %s3448_s6 = inlined_call_operand.vmem [shape: f32[32,192], index: 6, kind: input, shape index: {}]   ;;  %s3449_s7 = inlined_call_operand.vmem [shape: f32[64,32], index: 7, kind: input, shape index: {}]   ;;  %s3450_s8 = inlined_call_operand.vmem [shape: f32[64,32], index: 8, kind: input, shape index: {}]   ;;  %s3451_s9 = inlined_call_operand.vmem [shape: f32[32,128], index: 9, kind: input, shape index: {}]   ;;  %s3452_s10 = inlined_call_operand.vmem [shape: f32[1,128], index: 10, kind: input, shape index: {}]   ;;  %s3453_s11 = inlined_call_operand.vmem [shape: f32[128,32], index: 11, kind: input, shape index: {}]   ;;  %s3454_s12 = inlined_call_operand.vmem [shape: f32[1,32], index: 12, kind: input, shape index: {}]   ;;  %s3455_s13 = inlined_call_operand.hbm [shape: f32[2,8,32], index: 13, kind: output, shape index: {0}]   ;;  %s3456_s14 = inlined_call_operand.hbm [shape: f32[2,16,32], index: 14, kind: output, shape index: {1}]  }
   0x1   :  { %v146_v0 = vld [vmem:[%s3443_s1] sm:$0xff]  ;;  %v71_v4 = vld [vmem:[%s3445_s3 + $0x10] sm:$0xff]  ;;  %v147_v7 = vld [vmem:[%s3443_s1 + $0x8] sm:$0xff] }
   0x2   :  { %v2480_v1 = vld [vmem:[%s3442_s0] sm:$0xff]  ;;  %v218_v2 = vsel %vm150_vm0, %v146_v0, 0.0  ;;  %139 = vmatpush.msra.mxu2 %v71_v4  ;;  %v148_v8 = vld [vmem:[%s3443_s1 + $0x10] sm:$0xff] }
   0x3   :  { %v151_v3 = vsel %vm150_vm0, %v2480_v1, 0.0  ;;  %219 = vadd.xlane.f32.xlu0 %v218_v2  ;;  %v48_v5 = vld [vmem:[%s3444_s2] sm:$0x3] }
   0x4   :  { %152 = vadd.xlane.f32.xlu1 %v151_v3  ;;  %v2036_v6 = vmul.f32 -1.442695, %v48_v5 }
   0x5   :  { %21 = vsyncpa [#allocation5], 0  ;;  %v221_v9 = vsel %vm150_vm0, %v147_v7, 0.0  ;;  %v224_v10 = vsel %vm150_vm0, %v148_v8, 0.0  ;;  %v2502_v12 = vld [vmem:[%s3442_s0 + $0x8] sm:$0xff]  ;;  %vm80_vm5 = vcmask 64512  }
   0x6   :  { %2195 = vpow2.f32 %v2036_v6  ;;  %v154_v14 = vsel %vm150_vm0, %v2502_v12, 0.0  ;;  %v2387_v26 = vmov 32.0   ;;  %v70_v30 = vld [vmem:[%s3445_s3 + $0x8] sm:$0xff]  ;;  %v69_v32 = vld [vmem:[%s3445_s3] sm:$0xff]  ;;  %v149_v46 = vld [vmem:[%s3443_s1 + $0x18] sm:$0xff]  ;;  %s2388_s17 = smov 64  }
   0x7   :  { %119 = vmatpush.msra.mxu1 %v70_v30  ;;  %99 = vmatpush.msra.mxu0 %v69_v32  ;;  %v227_v50 = vsel %vm150_vm0, %v149_v46, 0.0  ;;  %v2556_v62 = vld [vmem:[%s3446_s4] sm:$0x7]  ;;  %v392_v6 = vld [vmem:[%s3448_s6 + $0x30] sm:$0xff]  ;;  %s2390_s29 = smov 112   ;;  %s2391_s3 = smov 32  }
   0x8   :  { %v76_v63 = vperm.slane %v2556_v62, 2  ;;  %2134 = vmatpush.msrb.mxu2 %v392_v6  ;;  %s2392_s30 = smov 16   ;;  %s2393_s15 = smov 80  }
   0x9   :  { %418 = vmatpush.msrb.mxu1 %v392_v6  ;;  %s2394_s16 = smov 96   ;;  %s2396_s21 = smov 128  }
   0xa   :  { %s2398_s22 = smov [#allocation2]  }
   0xb   :  { %222 = vadd.xlane.f32.xlu0 %v221_v9  ;;  %v390_v9 = vld [vmem:[%s3448_s6 + $0x20] sm:$0xff] }
   0xc   :  { %225 = vadd.xlane.f32.xlu1 %v224_v10  ;;  %v2196_v11 = vpop.eup %2195  ;;  %v330_v10 = vld [vmem:[%s3447_s5 + $0x20] sm:$0xff]  ;;  %419 = vmatpush.msrb.mxu1 %v390_v9 }
   0xd   :  { %v52_v13 = vadd.f32 1.0, %v2196_v11  ;;  %v331_v11 = vld [vmem:[%s3447_s5 + $0x28] sm:$0xff]  ;;  %2135 = vmatpush.msrb.mxu2 %v390_v9 }
   0xf   :  { %2197 = vrcp.f32 %v52_v13  ;;  %v64_v17 = vand.u32 2147483648, %v52_v13  ;;  %vm58_vm1 = vweird.f32 %v52_v13  ;;  %v62_v19 = vand.u32 2147483647, %v52_v13 }
  0x10   :  { %2199 = vrcp.f32 %v2387_v26 }
  0x11   :  { %v65_v21 = vor.u32 1.1754944e-38, %v64_v17  ;;  %vm63_vm4 = vcmp.eq.f32.partialorder %v62_v19, 8.507059e+37 }
  0x14   :  { %155 = vadd.xlane.f32.xlu1 %v154_v14  ;;  %v388_v14 = vld [vmem:[%s3448_s6 + $0x10] sm:$0xff] }
  0x15   :  { %v2198_v15 = vpop.eup %2197  ;;  %420 = vmatpush.msrb.mxu1 %v388_v14  ;;  %2136 = vmatpush.msrb.mxu2 %v388_v14 }
  0x16   :  { %v54_v16 = vmul.f32 %v2198_v15, %v52_v13  ;;  %vm59_vm2 = vweird.f32 %v2198_v15  ;;  %v2200_v27 = vpop.eup %2199 }
  0x17   :  { %vm60_vm3 = vmor %vm58_vm1, %vm59_vm2  ;;  %v158_v28 = vmul.f32 32.0, %v2200_v27  ;;  %vm162_vm6 = vweird.f32 %v2200_v27 }
  0x18   :  { %v55_v18 = vsub.f32 1.0, %v54_v16 }
  0x19   :  { %v159_v29 = vsub.f32 1.0, %v158_v28 }
  0x1a   :  { %v56_v20 = vmul.f32 %v2198_v15, %v55_v18 }
  0x1b   :  { %v160_v31 = vmul.f32 %v2200_v27, %v159_v29 }
  0x1c   :  { %v57_v22 = vadd.f32 %v2198_v15, %v56_v20  ;;  %v328_v20 = vld [vmem:[%s3447_s5 + $0x10] sm:$0xff] }
  0x1d   :  { %v161_v33 = vadd.f32 %v2200_v27, %v160_v31 }
  0x1e   :  { %v61_v23 = vsel %vm60_vm3, %v2198_v15, %v57_v22 }
  0x1f   :  { %v66_v24 = vsel %vm63_vm4, %v65_v21, %v61_v23  ;;  %v2515_v34 = vsel %vm162_vm6, %v2200_v27, %v161_v33  ;;  %v329_v21 = vld [vmem:[%s3447_s5 + $0x18] sm:$0xff]  ;;  %v386_v23 = vld [vmem:[%s3448_s6] sm:$0xff] }
  0x20   :  { %v68_v25 = vmul.f32 %v66_v24, %v48_v5  ;;  %v326_v24 = vld [vmem:[%s3447_s5] sm:$0xff]  ;;  %421 = vmatpush.msrb.mxu1 %v386_v23  ;;  %2137 = vmatpush.msrb.mxu2 %v386_v23 }
  0x22   :  { %2039 = vmatmul.msk.f32.vlgmr.msra.gmra.mxu2 %vm80_vm5, %v68_v25  ;;  %2038 = vmatmul.msk.f32.vlgmr.msra.gmra.mxu1 %vm80_vm5, %v68_v25 }
  0x23   :  { %2037 = vmatmul.msk.f32.vlgmr.msra.gmra.mxu0 %vm80_vm5, %v68_v25  ;;  %v327_v25 = vld [vmem:[%s3447_s5 + $0x8] sm:$0xff] }
  0x76   :  { %v220_v35 = vpop.xlane.xlu0 %219 }
  0x77   :  { %v153_v36 = vpop.xlane.xlu1 %152  ;;  %v230_v37 = vmul.f32 %v220_v35, %v2515_v34 }
  0x78   :  { %v164_v43 = vmul.f32 %v2515_v34, %v153_v36 }
  0x79   :  { %v2518_v38 = vsub.f32 %v146_v0, %v230_v37 }
  0x7a   :  { %v2534_v49 = vsub.f32 %v2480_v1, %v164_v43 }
  0x7b   :  { %v238_v39 = vmul.f32 %v2518_v38, %v2518_v38 }
  0x7c   :  { %v168_v57 = vmul.f32 %v2534_v49, %v2534_v49 }
  0x7d   :  { %v242_v40 = vsel %vm150_vm0, %v238_v39, 0.0 }
  0x7e   :  { %243 = vadd.xlane.f32.xlu2 %v242_v40  ;;  %v223_v41 = vpop.xlane.xlu0 %222  ;;  %v170_v59 = vsel %vm150_vm0, %v168_v57, 0.0 }
  0x7f   :  { %v226_v42 = vpop.xlane.xlu1 %225  ;;  %v231_v44 = vmul.f32 %v223_v41, %v2515_v34 }
  0x80   :  { %v232_v45 = vmul.f32 %v226_v42, %v2515_v34 }
  0x81   :  { %v2529_v47 = vsub.f32 %v147_v7, %v231_v44  ;;  %v332_v7 = vld [vmem:[%s3447_s5 + $0x30] sm:$0xff] }
  0x82   :  { %v2531_v48 = vsub.f32 %v148_v8, %v232_v45  ;;  %v333_v8 = vld [vmem:[%s3447_s5 + $0x38] sm:$0xff]  ;;  %352 = vmatpush.msra.mxu3 %v332_v7  ;;  %s2004_s5 = sshll.u32 %s2398_s22, 4  ;;  %s2005_s5 = int_to_ptr.vmem [resolvable:$true] %s2004_s5 }
  0x83   :  { %v239_v51 = vmul.f32 %v2529_v47, %v2529_v47  ;;  %375 = vmatpush.msrb.mxu0 %v333_v8 }
  0x84   :  { %v240_v52 = vmul.f32 %v2531_v48, %v2531_v48  ;;  %353 = vmatpush.msra.mxu3 %v330_v10 }
  0x85   :  { %v245_v53 = vsel %vm150_vm0, %v239_v51, 0.0  ;;  %376 = vmatpush.msrb.mxu0 %v331_v11  ;;  %v75_v51 = vperm.slane %v2556_v62, 1 }
  0x86   :  { %v248_v54 = vsel %vm150_vm0, %v240_v52, 0.0  ;;  %228 = vadd.xlane.f32.xlu2 %v227_v50  ;;  %246 = vadd.xlane.f32.xlu0 %v245_v53  ;;  %v74_v52 = vperm.slane %v2556_v62, 0 }
  0x87   :  { %v156_v55 = vpop.xlane.xlu1 %155  ;;  %249 = vadd.xlane.f32.xlu1 %v248_v54  ;;  %354 = vmatpush.msra.mxu3 %v328_v20 }
  0x88   :  { %v165_v56 = vmul.f32 %v2515_v34, %v156_v55  ;;  %377 = vmatpush.msrb.mxu0 %v329_v21 }
  0x89   :  { %355 = vmatpush.msra.mxu3 %v326_v24 }
  0x8a   :  { %v2547_v58 = vsub.f32 %v2502_v12, %v165_v56  ;;  %378 = vmatpush.msrb.mxu0 %v327_v25 }
  0x8c   :  { %v169_v60 = vmul.f32 %v2547_v58, %v2547_v58 }
  0x8e   :  { %v173_v61 = vsel %vm150_vm0, %v169_v60, 0.0  ;;  %171 = vadd.xlane.f32.xlu2 %v170_v59 }
  0x8f   :  { %174 = vadd.xlane.f32.xlu1 %v173_v61 }
  0x9f   :  { %v121_v56 = vpop.f32.mrf.mxu1 }
  0xa0   :  { %v101_v59 = vpop.f32.mrf.mxu0 }
  0xa1   :  { %v102_v7 = vadd.f32 %v101_v59, %v74_v52 }
  0xa3   :  { %v2655_v10 = vperm.slane %v102_v7, 0 }
  0xa5   :  { %v141_v0 = vpop.f32.mrf.mxu2 }
  0xa6   :  { %v2559_v1 = vadd.f32 %v141_v0, %v76_v63  ;;  %v2640_v0 = vadd.f32 %v121_v56, %v75_v51 }
  0xa8   :  { %v2562_v2 = vperm.slane %v2559_v1, 0  ;;  %v211_v60 = vrot.slane %v2559_v1, 1 }
  0xaa   :  { %316 = vrot.lane.b32.xlu0 %v2562_v2, %s2388_s17  ;;  %v2657_v11 = vperm.slane %v211_v60, 0 }
  0xf1   :  { %v244_v3 = vpop.xlane.xlu2 %243 }
  0xf2   :  { %v254_v4 = vmul.f32 %v244_v3, %v2515_v34 }
  0xf4   :  { %v2567_v5 = vadd.f32 1e-05, %v254_v4 }
  0xf6   :  { %2201 = vrsqrt.f32 %v2567_v5  ;;  %vm268_vm10 = vweird.f32 %v2567_v5 }
  0xf9   :  { %v229_v12 = vpop.xlane.xlu2 %228  ;;  %v247_v13 = vpop.xlane.xlu0 %246 }
  0xfa   :  { %v233_v15 = vmul.f32 %v229_v12, %v2515_v34  ;;  %v255_v16 = vmul.f32 %v247_v13, %v2515_v34  ;;  %v2593_v17 = vpop.xlane.xlu1 %249  ;;  %v2662_v13 = vperm.slane %v2640_v0, 0 }
  0xfc   :  { %v2595_v18 = vsub.f32 %v149_v46, %v233_v15  ;;  %v2597_v19 = vadd.f32 1e-05, %v255_v16  ;;  %v2605_v22 = vpop.eup %2201  ;;  %v203_v16 = vrot.slane %v102_v7, 1 }
  0xfd   :  { %v263_v27 = vmul.f32 %v2605_v22, %v2567_v5  ;;  %vm269_vm7 = vweird.f32 %v2605_v22 }
  0xfe   :  { %v241_v26 = vmul.f32 %v2595_v18, %v2595_v18  ;;  %2203 = vrsqrt.f32 %v2597_v19  ;;  %vm2636_vm11 = vmor %vm268_vm10, %vm269_vm7  ;;  %vm278_vm15 = vweird.f32 %v2597_v19  ;;  %v2673_v23 = vperm.slane %v203_v16, 0 }
  0xff   :  { %v264_v33 = vmul.f32 %v2605_v22, %v263_v27  ;;  %vm479_vm10 = vcmask 130048  }
 0x100   :  { %v251_v28 = vsel %vm150_vm0, %v241_v26, 0.0 }
 0x101   :  { %252 = vadd.xlane.f32.xlu2 %v251_v28  ;;  %v172_v29 = vpop.xlane.xlu2 %171  ;;  %v265_v39 = vmul.f32 0.5, %v264_v33 }
 0x102   :  { %v176_v30 = vmul.f32 %v172_v29, %v2515_v34  ;;  %v175_v31 = vpop.xlane.xlu1 %174 }
 0x103   :  { %v177_v32 = vmul.f32 %v175_v31, %v2515_v34  ;;  %v266_v42 = vsub.f32 1.5, %v265_v39 }
 0x104   :  { %v178_v35 = vadd.f32 1e-05, %v176_v30  ;;  %v2625_v36 = vpop.eup %2203 }
 0x105   :  { %v179_v37 = vadd.f32 1e-05, %v177_v32  ;;  %v273_v40 = vmul.f32 %v2625_v36, %v2597_v19  ;;  %v267_v53 = vmul.f32 %v2605_v22, %v266_v42  ;;  %vm279_vm1 = vweird.f32 %v2625_v36  ;;  %v389_v42 = vld [vmem:[%s3448_s6 + $0x18] sm:$0xff] }
 0x106   :  { %2205 = vrsqrt.f32 %v178_v35  ;;  %vm186_vm8 = vweird.f32 %v178_v35  ;;  %vm280_vm3 = vmor %vm278_vm15, %vm279_vm1 }
 0x107   :  { %2207 = vrsqrt.f32 %v179_v37  ;;  %v274_v43 = vmul.f32 %v2625_v36, %v273_v40  ;;  %vm196_vm12 = vweird.f32 %v179_v37  ;;  %v271_v1 = vsel %vm2636_vm11, %v2605_v22, %v267_v53  ;;  %v393_v40 = vld [vmem:[%s3448_s6 + $0x38] sm:$0xff] }
 0x108   :  { %v302_v14 = vmul.f32 %v271_v1, %v2518_v38  ;;  %447 = vmatpush.msra.mxu2 %v393_v40  ;;  %vm521_vm11 = vcmask 195584  }
 0x109   :  { %v275_v54 = vmul.f32 0.5, %v274_v43 }
 0x10a   :  { %v312_v22 = vmul.f32 %v2662_v13, %v302_v14 }
 0x10b   :  { %v276_v3 = vsub.f32 1.5, %v275_v54 }
 0x10c   :  { %v2206_v41 = vpop.eup %2205 }
 0x10d   :  { %v2208_v44 = vpop.eup %2207  ;;  %v181_v45 = vmul.f32 %v2206_v41, %v178_v35  ;;  %vm187_vm9 = vweird.f32 %v2206_v41  ;;  %v277_v15 = vmul.f32 %v2625_v36, %v276_v3 }
 0x10e   :  { %v191_v46 = vmul.f32 %v2208_v44, %v179_v37  ;;  %vm197_vm13 = vweird.f32 %v2208_v44  ;;  %vm2642_vm14 = vmor %vm186_vm8, %vm187_vm9 }
 0x10f   :  { %v182_v50 = vmul.f32 %v2206_v41, %v181_v45  ;;  %vm2651_vm2 = vmor %vm196_vm12, %vm197_vm13  ;;  %v281_v38 = vsel %vm280_vm3, %v2625_v36, %v277_v15  ;;  %vm1575_vm12 = vcmask 523264   ;;  %vm1016_vm13 = vcmask 392192  }
 0x110   :  { %v192_v55 = vmul.f32 %v2208_v44, %v191_v46  ;;  %v303_v27 = vmul.f32 %v281_v38, %v2529_v47  ;;  %v387_v46 = vld [vmem:[%s3448_s6 + $0x8] sm:$0xff] }
 0x111   :  { %v183_v57 = vmul.f32 0.5, %v182_v50 }
 0x112   :  { %v193_v61 = vmul.f32 0.5, %v192_v55  ;;  %v313_v29 = vmul.f32 %v2662_v13, %v303_v27 }
 0x113   :  { %v184_v62 = vsub.f32 1.5, %v183_v57 }
 0x114   :  { %v194_v6 = vsub.f32 1.5, %v193_v61 }
 0x115   :  { %v185_v5 = vmul.f32 %v2206_v41, %v184_v62 }
 0x116   :  { %v195_v8 = vmul.f32 %v2208_v44, %v194_v6 }
 0x117   :  { %v189_v12 = vsel %vm2642_vm14, %v2206_v41, %v185_v5  ;;  %v391_v41 = vld [vmem:[%s3448_s6 + $0x28] sm:$0xff]  ;;  %s2389_s6 = smov 48  }
 0x118   :  { %v200_v19 = vmul.f32 %v189_v12, %v2534_v49  ;;  %v199_v20 = vsel %vm2651_vm2, %v2208_v44, %v195_v8  ;;  %448 = vmatpush.msra.mxu2 %v391_v41 }
 0x119   :  { %318 = vrot.lane.b32.xlu2 %v2657_v11, %s2388_s17  ;;  %v201_v49 = vmul.f32 %v199_v20, %v2547_v58  ;;  %v256_v58 = vmul.f32 %v2593_v17, %v2515_v34  ;;  %v307_v17 = vrot.slane %v2640_v0, 1 }
 0x11a   :  { %v208_v21 = vmul.f32 %v2655_v10, %v200_v19  ;;  %449 = vmatpush.msra.mxu2 %v389_v42 }
 0x11b   :  { %v209_v28 = vmul.f32 %v2673_v23, %v201_v49  ;;  %v260_v32 = vadd.f32 1e-05, %v256_v58  ;;  %v2704_v50 = vperm.slane %v307_v17, 0 }
 0x11c   :  { %v317_v24 = vpop.permute.xlu0 %316  ;;  %v216_v25 = vadd.f32 %v2562_v2, %v208_v21  ;;  %450 = vmatpush.msra.mxu2 %v387_v46 }
 0x11d   :  { %v322_v26 = vadd.f32 %v317_v24, %v312_v22  ;;  %v217_v30 = vadd.f32 %v2657_v11, %v209_v28  ;;  %v323_v31 = vadd.f32 %v317_v24, %v313_v29  ;;  %2209 = vrsqrt.f32 %v260_v32 }
 0x11e   :  { %2040 = vmatmul.msk.f32.vlgmr.msra.gmra.mxu3 %vm150_vm0, %v216_v25  ;;  %2042 = vmatmul.msk.f32.vlgmr.msrb.gmra.mxu0 %vm150_vm0, %v216_v25  ;;  %vm288_vm4 = vweird.f32 %v260_v32 }
 0x11f   :  { %2044 = vmatmul.msk.f32.vlgmr.msrb.gmra.mxu1 %vm150_vm0, %v322_v26 }
 0x123   :  { %v2210_v47 = vpop.eup %2209 }
 0x124   :  { %v283_v33 = vmul.f32 %v2210_v47, %v260_v32  ;;  %vm289_vm5 = vweird.f32 %v2210_v47 }
 0x125   :  { %vm290_vm6 = vmor %vm288_vm4, %vm289_vm5 }
 0x126   :  { %2041 = vmatmul.msk.f32.gmra.mxu3 %vm150_vm0, %v217_v30  ;;  %2043 = vmatmul.msk.f32.gmra.mxu0 %vm150_vm0, %v217_v30  ;;  %v284_v35 = vmul.f32 %v2210_v47, %v283_v33 }
 0x127   :  { %2045 = vmatmul.msk.f32.gmra.mxu1 %vm150_vm0, %v323_v31 }
 0x128   :  { %v285_v36 = vmul.f32 0.5, %v284_v35 }
 0x12a   :  { %v286_v37 = vsub.f32 1.5, %v285_v36 }
 0x12c   :  { %v287_v39 = vmul.f32 %v2210_v47, %v286_v37 }
 0x12e   :  { %v291_v44 = vsel %vm290_vm6, %v2210_v47, %v287_v39 }
 0x12f   :  { %v304_v52 = vmul.f32 %v291_v44, %v2531_v48 }
 0x131   :  { %v314_v53 = vmul.f32 %v2704_v50, %v304_v52 }
 0x174   :  { %v253_v43 = vpop.xlane.xlu2 %252 }
 0x175   :  { %v257_v45 = vmul.f32 %v253_v43, %v2515_v34 }
 0x177   :  { %v261_v51 = vadd.f32 1e-05, %v257_v45 }
 0x179   :  { %2211 = vrsqrt.f32 %v261_v51  ;;  %vm298_vm8 = vweird.f32 %v261_v51 }
 0x17c   :  { %v319_v54 = vpop.permute.xlu2 %318 }
 0x17d   :  { %v324_v55 = vadd.f32 %v319_v54, %v314_v53 }
 0x17f   :  { %v2212_v56 = vpop.eup %2211  ;;  %2046 = vmatmul.msk.f32.vlgmr.msrb.gmra.mxu2 %vm150_vm0, %v324_v55 }
 0x180   :  { %v293_v57 = vmul.f32 %v2212_v56, %v261_v51  ;;  %vm299_vm7 = vweird.f32 %v2212_v56 }
 0x181   :  { %vm300_vm9 = vmor %vm298_vm8, %vm299_vm7 }
 0x182   :  { %v294_v59 = vmul.f32 %v2212_v56, %v293_v57 }
 0x184   :  { %v295_v60 = vmul.f32 0.5, %v294_v59 }
 0x186   :  { %v296_v61 = vsub.f32 1.5, %v295_v60 }
 0x188   :  { %v297_v63 = vmul.f32 %v2212_v56, %v296_v61 }
 0x18a   :  { %v301_v62 = vsel %vm300_vm9, %v2212_v56, %v297_v63 }
 0x18b   :  { %v305_v48 = vmul.f32 %v301_v62, %v2595_v18 }
 0x18d   :  { %v315_v0 = vmul.f32 %v2704_v50, %v305_v48 }
 0x18f   :  { %v325_v3 = vadd.f32 %v319_v54, %v315_v0 }
 0x191   :  { %2047 = vmatmul.msk.f32.gmra.mxu2 %vm150_vm0, %v325_v3 }
 0x199   :  { %2048 = vmatmul.msk.f32.vlgmr.msra.gmra.mxu2 %vm150_vm0, %v322_v26 }
 0x19b   :  { %v380_v32 = vpop.f32.mrf.mxu0 }
 0x19c   :  { %v423_v4 = vpop.f32.mrf.mxu1 }
 0x19d   :  { %598 = vrot.lane.b32.xlu0 %v423_v4, %s2389_s6  ;;  %v2723_v1 = vmul.f32 0.25, %v423_v4 }
 0x1a1   :  { %v357_v6 = vpop.f32.mrf.mxu3  ;;  %2049 = vmatmul.msk.f32.gmra.mxu2 %vm150_vm0, %v323_v31 }
 0x1a2   :  { %596 = vrot.lane.b32.xlu2 %v357_v6, %s2389_s6  ;;  %v2718_v18 = vmul.f32 0.25, %v357_v6 }
 0x1a3   :  { %v2823_v42 = vpop.f32.mrf.mxu0 }
 0x1a4   :  { %v426_v7 = vpop.f32.mrf.mxu1 }
 0x1a5   :  { %475 = vrot.lane.b32.xlu0 %v423_v4, %s2388_s17  ;;  %600 = vrot.lane.b32.xlu1 %v426_v7, %s2389_s6  ;;  %v2742_v5 = vmul.f32 0.25, %v426_v7 }
 0x1a9   :  { %2050 = vmatmul.msk.f32.gmra.mxu2 %vm150_vm0, %v324_v55  ;;  %v360_v12 = vpop.f32.mrf.mxu3 }
 0x1aa   :  { %590 = vrot.lane.b32.xlu2 %v2718_v18, %s2390_s29  ;;  %v2755_v15 = vmul.f32 0.25, %v360_v12 }
 0x1ad   :  { %592 = vrot.lane.b32.xlu0 %v2723_v1, %s2390_s29  ;;  %473 = vrot.lane.b32.xlu1 %v357_v6, %s2388_s17 }
 0x1b1   :  { %2051 = vmatmul.msk.f32.gmra.mxu2 %vm150_vm0, %v325_v3 }
 0x1b2   :  { %728 = vrot.lane.b32.xlu2 %v423_v4, %s2391_s3 }
 0x1b5   :  { %477 = vrot.lane.b32.xlu0 %v426_v7, %s2388_s17  ;;  %855 = vrot.lane.b32.xlu1 %v423_v4, %s2392_s30 }
 0x1ba   :  { %853 = vrot.lane.b32.xlu2 %v357_v6, %s2392_s30 }
 0x1bd   :  { %726 = vrot.lane.b32.xlu0 %v357_v6, %s2391_s3  ;;  %857 = vrot.lane.b32.xlu1 %v426_v7, %s2392_s30 }
 0x1c2   :  { %730 = vrot.lane.b32.xlu2 %v426_v7, %s2391_s3 }
 0x1c5   :  { %847 = vrot.lane.b32.xlu0 %v2718_v18, %s2393_s15  ;;  %720 = vrot.lane.b32.xlu1 %v2718_v18, %s2394_s16 }
 0x1ca   :  { %722 = vrot.lane.b32.xlu2 %v2723_v1, %s2394_s16 }
 0x1cd   :  { %594 = vrot.lane.b32.xlu0 %v2742_v5, %s2390_s29  ;;  %849 = vrot.lane.b32.xlu1 %v2723_v1, %s2393_s15 }
 0x1d5   :  { %851 = vrot.lane.b32.xlu0 %v2742_v5, %s2393_s15 }
 0x1fc   :  { %v597_v9 = vpop.permute.xlu2 %596 }
 0x202   :  { %v429_v8 = vpop.f32.mrf.mxu2 }
 0x203   :  { %1146 = vrot.lane.b32.xlu1 %v429_v8, %s2389_s6  ;;  %1025 = vrot.lane.b32.xlu2 %v429_v8, %s2388_s17  ;;  %v2769_v25 = vmul.f32 0.25, %v429_v8 }
 0x204   :  { %v591_v16 = vpop.permute.xlu2 %590 }
 0x20b   :  { %724 = vrot.lane.b32.xlu1 %v2742_v5, %s2394_s16  ;;  %1144 = vrot.lane.b32.xlu2 %v360_v12, %s2389_s6 }
 0x20c   :  { %v729_v22 = vpop.permute.xlu2 %728 }
 0x20f   :  { %v599_v14 = vpop.permute.xlu0 %598 }
 0x213   :  { %1138 = vrot.lane.b32.xlu1 %v2755_v15, %s2390_s29 }
 0x214   :  { %v432_v19 = vpop.f32.mrf.mxu2  ;;  %v854_v49 = vpop.permute.xlu2 %853 }
 0x215   :  { %1027 = vrot.lane.b32.xlu0 %v432_v19, %s2388_s17  ;;  %1148 = vrot.lane.b32.xlu2 %v432_v19, %s2389_s6  ;;  %v2796_v47 = vmul.f32 0.25, %v432_v19 }
 0x217   :  { %v476_v20 = vpop.permute.xlu0 %475  ;;  %v601_v21 = vpop.permute.xlu1 %600 }
 0x218   :  { %2061 = vmatpush.xpose.msk.msra.mxu1 %vm479_vm10, %v601_v21 }
 0x21b   :  { %1405 = vrot.lane.b32.xlu1 %v432_v19, %s2392_s30 }
 0x21c   :  { %2062 = vmatpush.xpose.msk.msra.mxu1 %vm479_vm10, %v599_v14  ;;  %v452_v26 = vpop.f32.mrf.mxu2  ;;  %v731_v58 = vpop.permute.xlu2 %730 }
 0x21d   :  { %1276 = vrot.lane.b32.xlu2 %v429_v8, %s2391_s3  ;;  %1023 = vrot.lane.b32.xlu0 %v360_v12, %s2388_s17 }
 0x21f   :  { %v593_v38 = vpop.permute.xlu0 %592  ;;  %v474_v24 = vpop.permute.xlu1 %473 }
 0x220   :  { %2063 = vmatpush.xpose.msk.msra.mxu1 %vm479_vm10, %v597_v9 }
 0x223   :  { %2064 = vmatmul.msk.f32.vlgmr.msra.gmra.mxu1 %vm479_vm10, %v591_v16  ;;  %1403 = vrot.lane.b32.xlu1 %v429_v8, %s2392_s30 }
 0x224   :  { %v455_v31 = vpop.f32.mrf.mxu2  ;;  %v723_v41 = vpop.permute.xlu2 %722 }
 0x225   :  { %1278 = vrot.lane.b32.xlu2 %v432_v19, %s2391_s3  ;;  %1140 = vrot.lane.b32.xlu0 %v2769_v25, %s2390_s29  ;;  %v2158_v39 = vpack.i.bf16 %v452_v26, %v455_v31 }
 0x227   :  { %v478_v27 = vpop.permute.xlu0 %477  ;;  %v856_v28 = vpop.permute.xlu1 %855 }
 0x228   :  { %2052 = vmatpush.xpose.msk.msra.mxu0 %vm479_vm10, %v478_v27  ;;  %2138 = vmatpush.xpose.msk.msrb.mxu3 %vm479_vm10, %v478_v27 }
 0x22b   :  { %2065 = vmatmul.msk.f32.gmra.mxu1 %vm479_vm10, %v593_v38  ;;  %1268 = vrot.lane.b32.xlu1 %v2755_v15, %s2394_s16 }
 0x22c   :  { %2053 = vmatpush.xpose.msk.msra.mxu0 %vm479_vm10, %v476_v20  ;;  %2139 = vmatpush.xpose.msk.msrb.mxu3 %vm479_vm10, %v476_v20  ;;  %v2808_v35 = vpop.f32.mrf.mxu2 }
 0x22d   :  { %1401 = vrot.lane.b32.xlu2 %v360_v12, %s2392_s30  ;;  %1274 = vrot.lane.b32.xlu0 %v360_v12, %s2391_s3  ;;  %v2829_v43 = vpack.i.bf16 %v2823_v42, %v2808_v35 }
 0x22f   :  { %v727_v29 = vpop.permute.xlu0 %726  ;;  %v858_v30 = vpop.permute.xlu1 %857 }
 0x230   :  { %2054 = vmatpush.xpose.msk.msra.mxu0 %vm479_vm10, %v474_v24  ;;  %2140 = vmatpush.xpose.msk.msrb.mxu3 %vm479_vm10, %v474_v24 }
 0x231   :  { %2079 = vmatpush.xpose.msk.msrb.mxu1 %vm479_vm10, %v858_v30 }
 0x233   :  { %2055 = vmatmul.msk.f32.vlgmr.msra.gmra.mxu0 %vm479_vm10, %v2718_v18  ;;  %2056 = vmatmul.msk.f32.vlgmr.msrb.gmra.mxu3 %vm479_vm10, %v2723_v1 }
 0x234   :  { %574 = vmatpush.msrb.mxu0 %v455_v31  ;;  %2070 = vmatpush.xpose.msk.msra.mxu3 %vm479_vm10, %v731_v58  ;;  %v2818_v40 = vpop.f32.mrf.mxu2 }
 0x235   :  { %1397 = vrot.lane.b32.xlu1 %v2769_v25, %s2393_s15  ;;  %2080 = vmatpush.xpose.msk.msrb.mxu1 %vm479_vm10, %v856_v28  ;;  %v2178_v17 = vpack.i.bf16 %v2818_v40, %v380_v32 }
 0x236   :  { %575 = vmatpush.msrb.mxu0 %v452_v26  ;;  %1270 = vrot.lane.b32.xlu2 %v2769_v25, %s2394_s16 }
 0x237   :  { %v848_v33 = vpop.permute.xlu0 %847  ;;  %1142 = vrot.lane.b32.xlu0 %v2796_v47, %s2390_s29  ;;  %v721_v37 = vpop.permute.xlu1 %720 }
 0x238   :  { %576 = vmatpush.msrb.mxu0 %v380_v32  ;;  %2071 = vmatpush.xpose.msk.msra.mxu3 %vm479_vm10, %v729_v22 }
 0x239   :  { %2081 = vmatpush.xpose.msk.msrb.mxu1 %vm479_vm10, %v854_v49 }
 0x23b   :  { %2057 = vmatmul.msk.f32.gmra.mxu3 %vm479_vm10, %v2742_v5 }
 0x23c   :  { %2072 = vmatpush.xpose.msk.msra.mxu3 %vm479_vm10, %v727_v29 }
 0x23d   :  { %800 = vrot.lane.b32.xlu1 %v380_v32, %s2394_s16 }
 0x23e   :  { %1399 = vrot.lane.b32.xlu2 %v2796_v47, %s2393_s15 }
 0x23f   :  { %v595_v36 = vpop.permute.xlu0 %594  ;;  %1395 = vrot.lane.b32.xlu0 %v2755_v15, %s2393_s15  ;;  %v850_v44 = vpop.permute.xlu1 %849 }
 0x240   :  { %2066 = vmatmul.msk.f32.gmra.mxu1 %vm479_vm10, %v595_v36 }
 0x243   :  { %2073 = vmatmul.msk.f32.vlgmr.msra.gmra.mxu3 %vm479_vm10, %v721_v37 }
 0x245   :  { %2159 = vrot.lane.b32.xlu1 %v2158_v39, %s2393_s15 }
 0x246   :  { %2154 = vrot.lane.b32.xlu2 %v2158_v39, %s2390_s29 }
 0x247   :  { %1272 = vrot.lane.b32.xlu0 %v2796_v47, %s2394_s16  ;;  %v852_v45 = vpop.permute.xlu0 %851 }
 0x248   :  { %2082 = vmatmul.msk.f32.vlgmr.msrb.gmra.mxu1 %vm479_vm10, %v848_v33 }
 0x24b   :  { %2074 = vmatmul.msk.f32.gmra.mxu3 %vm479_vm10, %v723_v41 }
 0x24d   :  { %2164 = vrot.lane.b32.xlu1 %v2158_v39, %s2394_s16 }
 0x24e   :  { %2179 = vrot.lane.b32.xlu2 %v2178_v17, %s2393_s15 }
 0x24f   :  { %2169 = vrot.lane.b32.xlu0 %v2829_v43, %s2390_s29 }
 0x250   :  { %2083 = vmatmul.msk.f32.gmra.mxu1 %vm479_vm10, %v850_v44 }
 0x255   :  { %2174 = vrot.lane.b32.xlu1 %v2178_v17, %s2390_s29 }
 0x258   :  { %2084 = vmatmul.msk.f32.gmra.mxu1 %vm479_vm10, %v852_v45 }
 0x25d   :  { %v1026_v46 = vpop.permute.xlu2 %1025 }
 0x265   :  { %v1145_v51 = vpop.permute.xlu2 %1144 }
 0x26f   :  { %v1149_v52 = vpop.permute.xlu2 %1148 }
 0x270   :  { %2097 = vmatpush.xpose.msk.msra.mxu1 %vm479_vm10, %v1149_v52 }
 0x275   :  { %v1147_v53 = vpop.permute.xlu1 %1146 }
 0x276   :  { %2098 = vmatpush.xpose.msk.msra.mxu1 %vm479_vm10, %v1147_v53 }
 0x277   :  { %v1277_v54 = vpop.permute.xlu2 %1276 }
 0x27a   :  { %2099 = vmatpush.xpose.msk.msra.mxu1 %vm479_vm10, %v1145_v51 }
 0x27d   :  { %v725_v55 = vpop.permute.xlu1 %724 }
 0x27e   :  { %2075 = vmatmul.msk.f32.gmra.mxu3 %vm479_vm10, %v725_v55 }
 0x27f   :  { %v1279_v56 = vpop.permute.xlu2 %1278 }
 0x285   :  { %v1139_v57 = vpop.permute.xlu1 %1138 }
 0x286   :  { %2100 = vmatmul.msk.f32.vlgmr.msra.gmra.mxu1 %vm479_vm10, %v1139_v57 }
 0x287   :  { %v1028_v59 = vpop.permute.xlu0 %1027  ;;  %v1402_v60 = vpop.permute.xlu2 %1401 }
 0x288   :  { %2088 = vmatpush.xpose.msk.msrb.mxu3 %vm479_vm10, %v1028_v59 }
 0x28c   :  { %2089 = vmatpush.xpose.msk.msrb.mxu3 %vm479_vm10, %v1026_v46 }
 0x28d   :  { %v1406_v61 = vpop.permute.xlu1 %1405 }
 0x28e   :  { %2115 = vmatpush.xpose.msk.msrb.mxu1 %vm479_vm10, %v1406_v61 }
 0x28f   :  { %v1024_v62 = vpop.permute.xlu0 %1023 }
 0x290   :  { %v1271_v63 = vpop.permute.xlu2 %1270  ;;  %2090 = vmatpush.xpose.msk.msrb.mxu3 %vm479_vm10, %v1024_v62 }
 0x293   :  { %2091 = vmatmul.msk.f32.vlgmr.msrb.gmra.mxu3 %vm479_vm10, %v2755_v15 }
 0x294   :  { %2106 = vmatpush.xpose.msk.msra.mxu3 %vm479_vm10, %v1279_v56 }
 0x295   :  { %v1404_v48 = vpop.permute.xlu1 %1403 }
 0x296   :  { %2116 = vmatpush.xpose.msk.msrb.mxu1 %vm479_vm10, %v1404_v48 }
 0x297   :  { %v1141_v3 = vpop.permute.xlu0 %1140 }
 0x298   :  { %2107 = vmatpush.xpose.msk.msra.mxu3 %vm479_vm10, %v1277_v54  ;;  %v1400_v0 = vpop.permute.xlu2 %1399  ;;  %2101 = vmatmul.msk.f32.gmra.mxu1 %vm479_vm10, %v1141_v3 }
 0x29a   :  { %2117 = vmatpush.xpose.msk.msrb.mxu1 %vm479_vm10, %v1402_v60 }
 0x29b   :  { %2092 = vmatmul.msk.f32.gmra.mxu3 %vm479_vm10, %v2769_v25 }
 0x29d   :  { %v1269_v4 = vpop.permute.xlu1 %1268 }
 0x29f   :  { %v1275_v7 = vpop.permute.xlu0 %1274 }
 0x2a0   :  { %v2155_v6 = vpop.permute.xlu2 %2154  ;;  %v2854_v18 = vpop.f32.mrf.mxu1  ;;  %2108 = vmatpush.xpose.msk.msra.mxu3 %vm479_vm10, %v1275_v7 }
 0x2a1   :  { %v2156_v1 = vunpack.i.l.bf16 %v2155_v6  ;;  %v640_v5 = vsel %vm521_vm11, %v2854_v18, -inf  ;;  %v2157_v8 = vunpack.i.h.bf16 %v2155_v6 }
 0x2a2   :  { %641 = vmax.xlane.f32.xlu1 %v640_v5 }
 0x2a3   :  { %704 = vmatpush.msrb.mxu2 %v2156_v1  ;;  %2093 = vmatmul.msk.f32.gmra.mxu3 %vm479_vm10, %v2796_v47 }
 0x2a5   :  { %705 = vmatpush.msrb.mxu2 %v2157_v8 }
 0x2a7   :  { %v1398_v9 = vpop.permute.xlu1 %1397 }
 0x2a8   :  { %v2861_v12 = vpop.f32.mrf.mxu1  ;;  %v2894_v39 = vpop.permute.xlu2 %2179 }
 0x2a9   :  { %v1143_v14 = vpop.permute.xlu0 %1142  ;;  %v643_v15 = vsel %vm521_vm11, %v2861_v12, -inf  ;;  %v2181_v44 = vunpack.i.l.bf16 %v2894_v39 }
 0x2aa   :  { %644 = vmax.xlane.f32.xlu2 %v643_v15  ;;  %2102 = vmatmul.msk.f32.gmra.mxu1 %vm479_vm10, %v1143_v14 }
 0x2ab   :  { %2109 = vmatmul.msk.f32.vlgmr.msra.gmra.mxu3 %vm479_vm10, %v1269_v4 }
 0x2af   :  { %v801_v16 = vpop.permute.xlu1 %800 }
 0x2b0   :  { %v2867_v19 = vpop.f32.mrf.mxu0 }
 0x2b1   :  { %v1396_v20 = vpop.permute.xlu0 %1395  ;;  %v522_v21 = vsel %vm521_vm11, %v2867_v19, -inf }
 0x2b2   :  { %523 = vmax.xlane.f32.xlu0 %v522_v21  ;;  %2118 = vmatmul.msk.f32.vlgmr.msrb.gmra.mxu1 %vm479_vm10, %v1396_v20 }
 0x2b3   :  { %2110 = vmatmul.msk.f32.gmra.mxu3 %vm479_vm10, %v1271_v63 }
 0x2b6   :  { %v2873_v22 = vpop.f32.mrf.mxu3 }
 0x2b7   :  { %v2160_v38 = vpop.permute.xlu1 %2159  ;;  %v525_v24 = vsel %vm521_vm11, %v2873_v22, -inf }
 0x2b8   :  { %v2161_v37 = vunpack.i.l.bf16 %v2160_v38  ;;  %v2162_v17 = vunpack.i.h.bf16 %v2160_v38 }
 0x2b9   :  { %v1273_v25 = vpop.permute.xlu0 %1272 }
 0x2ba   :  { %526 = vmax.xlane.f32.xlu0 %v525_v24  ;;  %2119 = vmatmul.msk.f32.gmra.mxu1 %vm479_vm10, %v1398_v9 }
 0x2bb   :  { %2111 = vmatmul.msk.f32.gmra.mxu3 %vm479_vm10, %v1273_v25 }
 0x2bd   :  { %v2879_v49 = vpop.f32.mrf.mxu1 }
 0x2be   :  { %v2881_v26 = vpop.f32.mrf.mxu3  ;;  %v646_v31 = vsel %vm521_vm11, %v2879_v49, -inf }
 0x2bf   :  { %v2165_v27 = vpop.permute.xlu1 %2164  ;;  %v528_v29 = vsel %vm521_vm11, %v2881_v26, -inf }
 0x2c0   :  { %v2166_v28 = vunpack.i.l.bf16 %v2165_v27  ;;  %529 = vmax.xlane.f32.xlu2 %v528_v29  ;;  %v2167_v30 = vunpack.i.h.bf16 %v2165_v27 }
 0x2c1   :  { %v2170_v4 = vpop.permute.xlu0 %2169 }
 0x2c2   :  { %831 = vmatpush.msra.mxu0 %v2166_v28  ;;  %647 = vmax.xlane.f32.xlu0 %v646_v31  ;;  %v2171_v14 = vunpack.i.l.bf16 %v2170_v4  ;;  %v2172_v15 = vunpack.i.h.bf16 %v2170_v4 }
 0x2c3   :  { %2120 = vmatmul.msk.f32.gmra.mxu1 %vm479_vm10, %v1400_v0 }
 0x2c4   :  { %832 = vmatpush.msra.mxu0 %v2167_v30 }
 0x2c5   :  { %v2888_v58 = vpop.f32.mrf.mxu1 }
 0x2c6   :  { %833 = vmatpush.msra.mxu0 %v801_v16  ;;  %v2890_v32 = vpop.f32.mrf.mxu3  ;;  %v897_v41 = vsel %vm521_vm11, %v2888_v58, -inf }
 0x2c7   :  { %v2175_v47 = vpop.permute.xlu1 %2174  ;;  %v770_v36 = vsel %vm521_vm11, %v2890_v32, -inf }
 0x2c8   :  { %v2176_v33 = vunpack.i.l.bf16 %v2175_v47  ;;  %771 = vmax.xlane.f32.xlu2 %v770_v36  ;;  %v2177_v8 = vunpack.i.h.bf16 %v2175_v47 }
 0x2ca   :  { %706 = vmatpush.msrb.mxu2 %v2176_v33  ;;  %898 = vmax.xlane.f32.xlu0 %v897_v41 }
 0x2cc   :  { %958 = vmatpush.msra.mxu2 %v2161_v37 }
 0x2cd   :  { %v2903_v51 = vpop.f32.mrf.mxu1 }
 0x2ce   :  { %959 = vmatpush.msra.mxu2 %v2162_v17  ;;  %v2899_v45 = vpop.f32.mrf.mxu3  ;;  %v900_v52 = vsel %vm521_vm11, %v2903_v51, -inf }
 0x2cf   :  { %v773_v46 = vsel %vm521_vm11, %v2899_v45, -inf }
 0x2d0   :  { %960 = vmatpush.msra.mxu2 %v2181_v44 }
 0x2d2   :  { %774 = vmax.xlane.f32.xlu0 %v773_v46 }
 0x2d5   :  { %v2907_v53 = vpop.f32.mrf.mxu1 }
 0x2d6   :  { %v903_v54 = vsel %vm521_vm11, %v2907_v53, -inf }
 0x2da   :  { %901 = vmax.xlane.f32.xlu0 %v900_v52 }
 0x2e2   :  { %904 = vmax.xlane.f32.xlu0 %v903_v54 }
 0x301   :  { %v2911_v55 = vpop.f32.mrf.mxu3 }
 0x302   :  { %v776_v56 = vsel %vm521_vm11, %v2911_v55, -inf }
 0x303   :  { %777 = vmax.xlane.f32.xlu1 %v776_v56  ;;  %v2915_v57 = vpop.f32.mrf.mxu1 }
 0x304   :  { %v1188_v59 = vsel %vm521_vm11, %v2915_v57, -inf }
 0x305   :  { %1189 = vmax.xlane.f32.xlu0 %v1188_v59 }
 0x315   :  { %v642_v60 = vpop.xlane.xlu1 %641  ;;  %v2919_v61 = vpop.f32.mrf.mxu1 }
 0x316   :  { %v649_v63 = vsub.f32 %v2854_v18, %v642_v60  ;;  %v2922_v62 = vpop.f32.mrf.mxu3  ;;  %v1191_v48 = vsel %vm521_vm11, %v2919_v61, -inf }
 0x317   :  { %1192 = vmax.xlane.f32.xlu0 %v1191_v48  ;;  %v1070_v0 = vsel %vm521_vm11, %v2922_v62, -inf }
 0x318   :  { %v652_v3 = vmul.f32 1.442695, %v649_v63  ;;  %1071 = vmax.xlane.f32.xlu2 %v1070_v0 }
 0x31a   :  { %2213 = vpow2.f32 %v652_v3 }
 0x31d   :  { %v645_v6 = vpop.xlane.xlu2 %644 }
 0x31e   :  { %v650_v7 = vsub.f32 %v2861_v12, %v645_v6  ;;  %v2929_v1 = vpop.f32.mrf.mxu3 }
 0x31f   :  { %v1073_v18 = vsel %vm521_vm11, %v2929_v1, -inf }
 0x320   :  { %v2933_v5 = vpop.eup %2213  ;;  %v654_v9 = vmul.f32 1.442695, %v650_v7  ;;  %1074 = vmax.xlane.f32.xlu0 %v1073_v18  ;;  %v2182_v18 = vunpack.i.h.bf16 %v2894_v39  ;;  %v2188_v39 = vpack.i.bf16 %v2808_v35, %v2818_v40 }
 0x321   :  { %2067 = vmatmul.msk.f32.vlgmr.msrb.gmra.mxu2 %vm521_vm11, %v2933_v5 }
 0x322   :  { %2215 = vpow2.f32 %v654_v9  ;;  %1252 = vmatpush.msrb.mxu2 %v2177_v8 }
 0x324   :  { %1253 = vmatpush.msrb.mxu2 %v2171_v14 }
 0x325   :  { %v524_v16 = vpop.xlane.xlu0 %523 }
 0x326   :  { %v531_v12 = vsub.f32 %v2867_v19, %v524_v16  ;;  %1254 = vmatpush.msrb.mxu2 %v2172_v15  ;;  %v2938_v20 = vpop.f32.mrf.mxu3 }
 0x327   :  { %v2940_v21 = vpop.f32.mrf.mxu1 }
 0x328   :  { %v2942_v38 = vpop.eup %2215  ;;  %v534_v24 = vmul.f32 1.442695, %v531_v12  ;;  %v1194_v25 = vsel %vm521_vm11, %v2940_v21, -inf }
 0x329   :  { %1195 = vmax.xlane.f32.xlu1 %v1194_v25  ;;  %2068 = vmatmul.msk.f32.gmra.mxu2 %vm521_vm11, %v2942_v38 }
 0x32a   :  { %2217 = vpow2.f32 %v534_v24 }
 0x32d   :  { %v527_v27 = vpop.xlane.xlu0 %526 }
 0x32e   :  { %v532_v28 = vsub.f32 %v2873_v22, %v527_v27  ;;  %v2949_v19 = vpop.f32.mrf.mxu3 }
 0x32f   :  { %v2951_v29 = vpop.f32.mrf.mxu1 }
 0x330   :  { %v2953_v30 = vpop.eup %2217  ;;  %v536_v31 = vmul.f32 1.442695, %v532_v28  ;;  %v1445_v47 = vsel %vm521_vm11, %v2951_v29, -inf  ;;  %2184 = vrot.lane.b32.xlu2 %v2829_v43, %s2393_s15 }
 0x331   :  { %2058 = vmatmul.msk.f32.vlgmr.msrb.gmra.mxu0 %vm521_vm11, %v2953_v30  ;;  %1446 = vmax.xlane.f32.xlu1 %v1445_v47 }
 0x332   :  { %2219 = vpow2.f32 %v536_v31  ;;  %1122 = vmatpush.msrb.mxu0 %v2818_v40  ;;  %v1318_v31 = vsel %vm521_vm11, %v2949_v19, -inf }
 0x333   :  { %v530_v22 = vpop.xlane.xlu2 %529 }
 0x334   :  { %v533_v33 = vsub.f32 %v2881_v26, %v530_v22  ;;  %1123 = vmatpush.msrb.mxu0 %v2808_v35 }
 0x335   :  { %v648_v36 = vpop.xlane.xlu0 %647 }
 0x336   :  { %v538_v37 = vmul.f32 1.442695, %v533_v33  ;;  %v651_v41 = vsub.f32 %v2879_v49, %v648_v36  ;;  %1124 = vmatpush.msrb.mxu0 %v2823_v42  ;;  %v2966_v17 = vpop.f32.mrf.mxu3 }
 0x337   :  { %v2968_v43 = vpop.f32.mrf.mxu1  ;;  %v1321_v44 = vsel %vm521_vm11, %v2966_v17, -inf }
 0x338   :  { %v2972_v46 = vpop.eup %2219  ;;  %v656_v52 = vmul.f32 1.442695, %v651_v41  ;;  %v1448_v26 = vsel %vm521_vm11, %v2968_v43, -inf  ;;  %1322 = vmax.xlane.f32.xlu0 %v1321_v44  ;;  %2221 = vpow2.f32 %v538_v37 }
 0x339   :  { %2059 = vmatmul.msk.f32.gmra.mxu0 %vm521_vm11, %v2972_v46  ;;  %1449 = vmax.xlane.f32.xlu1 %v1448_v26 }
 0x33a   :  { %2223 = vpow2.f32 %v656_v52 }
 0x33b   :  { %v772_v49 = vpop.xlane.xlu2 %771 }
 0x33c   :  { %v779_v54 = vsub.f32 %v2890_v32, %v772_v49 }
 0x33d   :  { %v899_v56 = vpop.xlane.xlu0 %898 }
 0x33e   :  { %v782_v59 = vmul.f32 1.442695, %v779_v54  ;;  %v906_v60 = vsub.f32 %v2888_v58, %v899_v56  ;;  %v2980_v63 = vpop.eup %2221  ;;  %v3015_v22 = vpop.f32.mrf.mxu3 }
 0x33f   :  { %v1324_v44 = vsel %vm521_vm11, %v3015_v22, -inf }
 0x340   :  { %v2982_v48 = vpop.f32.mrf.mxu1  ;;  %v2224_v0 = vpop.eup %2223  ;;  %v909_v3 = vmul.f32 1.442695, %v906_v60  ;;  %2225 = vpow2.f32 %v782_v59 }
 0x341   :  { %v1451_v4 = vsel %vm521_vm11, %v2982_v48, -inf  ;;  %2060 = vmatmul.msk.f32.gmra.mxu0 %vm521_vm11, %v2980_v63  ;;  %2069 = vmatmul.msk.f32.gmra.mxu2 %vm521_vm11, %v2224_v0  ;;  %v664_v9 = vsel %vm521_vm11, %v2224_v0, 0.0 }
 0x342   :  { %2227 = vpow2.f32 %v909_v3  ;;  %1452 = vmax.xlane.f32.xlu0 %v1451_v4 }
 0x345   :  { %v775_v32 = vpop.xlane.xlu0 %774 }
 0x346   :  { %v780_v58 = vsub.f32 %v2899_v45, %v775_v32  ;;  %v2990_v6 = vpop.eup %2225 }
 0x348   :  { %v2992_v7 = vpop.eup %2227  ;;  %v784_v8 = vmul.f32 1.442695, %v780_v58 }
 0x349   :  { %2076 = vmatmul.msk.f32.vlgmr.msra.gmra.mxu0 %vm521_vm11, %v2990_v6  ;;  %2085 = vmatmul.msk.f32.vlgmr.msra.gmra.mxu2 %vm521_vm11, %v2992_v7 }
 0x34a   :  { %2229 = vpow2.f32 %v784_v8  ;;  %1506 = vmatpush.msra.mxu2 %v2182_v18  ;;  %665 = vadd.xlane.f32.xlu0 %v664_v9 }
 0x34d   :  { %v902_v14 = vpop.xlane.xlu0 %901 }
 0x34e   :  { %v907_v45 = vsub.f32 %v2903_v51, %v902_v14  ;;  %v1076_v51 = vsel %vm521_vm11, %v2938_v20, -inf }
 0x350   :  { %v2230_v15 = vpop.eup %2229  ;;  %v911_v16 = vmul.f32 1.442695, %v907_v45 }
 0x351   :  { %2077 = vmatmul.msk.f32.gmra.mxu0 %vm521_vm11, %v2230_v15  ;;  %v791_v12 = vsel %vm521_vm11, %v2230_v15, 0.0  ;;  %v661_v15 = vsel %vm521_vm11, %v2942_v38, 0.0 }
 0x352   :  { %2231 = vpow2.f32 %v911_v16  ;;  %2189 = vrot.lane.b32.xlu1 %v2188_v39, %s2394_s16  ;;  %792 = vadd.xlane.f32.xlu0 %v791_v12 }
 0x355   :  { %v905_v24 = vpop.xlane.xlu0 %904 }
 0x356   :  { %v908_v25 = vsub.f32 %v2907_v53, %v905_v24 }
 0x358   :  { %v2232_v27 = vpop.eup %2231  ;;  %v913_v28 = vmul.f32 1.442695, %v908_v25  ;;  %v546_v25 = vsel %vm521_vm11, %v2980_v63, 0.0 }
 0x359   :  { %2086 = vmatmul.msk.f32.gmra.mxu2 %vm521_vm11, %v2232_v27  ;;  %v918_v35 = vsel %vm521_vm11, %v2232_v27, 0.0  ;;  %1077 = vmax.xlane.f32.xlu2 %v1076_v51 }
 0x35a   :  { %2233 = vpow2.f32 %v913_v28  ;;  %919 = vadd.xlane.f32.xlu0 %v918_v35 }
 0x360   :  { %v2234_v40 = vpop.eup %2233 }
 0x361   :  { %2087 = vmatmul.msk.f32.gmra.mxu2 %vm521_vm11, %v2234_v40  ;;  %1319 = vmax.xlane.f32.xlu2 %v1318_v31  ;;  %v921_v49 = vsel %vm521_vm11, %v2234_v40, 0.0 }
 0x376   :  { %v778_v53 = vpop.xlane.xlu1 %777 }
 0x377   :  { %v781_v47 = vsub.f32 %v2911_v55, %v778_v53 }
 0x378   :  { %v1190_v33 = vpop.xlane.xlu0 %1189 }
 0x379   :  { %v786_v36 = vmul.f32 1.442695, %v781_v47  ;;  %v1197_v37 = vsub.f32 %v2915_v57, %v1190_v33  ;;  %1348 = vrot.lane.b32.xlu2 %v2823_v42, %s2394_s16  ;;  %v543_v57 = vsel %vm521_vm11, %v2972_v46, 0.0 }
 0x37b   :  { %2235 = vpow2.f32 %v786_v36  ;;  %v1200_v41 = vmul.f32 1.442695, %v1197_v37 }
 0x37c   :  { %1325 = vmax.xlane.f32.xlu1 %v1324_v44 }
 0x37d   :  { %2237 = vpow2.f32 %v1200_v41 }
 0x381   :  { %v2236_v52 = vpop.eup %2235 }
 0x382   :  { %2078 = vmatmul.msk.f32.gmra.mxu0 %vm521_vm11, %v2236_v52  ;;  %v794_v55 = vsel %vm521_vm11, %v2236_v52, 0.0 }
 0x383   :  { %v3024_v26 = vpop.eup %2237  ;;  %795 = vadd.xlane.f32.xlu0 %v794_v55 }
 0x384   :  { %544 = vadd.xlane.f32.xlu1 %v543_v57  ;;  %2103 = vmatmul.msk.f32.vlgmr.msrb.gmra.mxu2 %vm521_vm11, %v3024_v26 }
 0x38a   :  { %v1193_v42 = vpop.xlane.xlu0 %1192 }
 0x38b   :  { %v1198_v54 = vsub.f32 %v2919_v61, %v1193_v42  ;;  %v1072_v56 = vpop.xlane.xlu2 %1071  ;;  %922 = vadd.xlane.f32.xlu0 %v921_v49 }
 0x38c   :  { %v1079_v59 = vsub.f32 %v2922_v62, %v1072_v56 }
 0x38d   :  { %v1202_v60 = vmul.f32 1.442695, %v1198_v54 }
 0x38e   :  { %v1082_v0 = vmul.f32 1.442695, %v1079_v59 }
 0x38f   :  { %2239 = vpow2.f32 %v1202_v60 }
 0x390   :  { %2241 = vpow2.f32 %v1082_v0 }
 0x393   :  { %v2185_v3 = vpop.permute.xlu2 %2184  ;;  %v1075_v46 = vpop.xlane.xlu0 %1074 }
 0x394   :  { %v2186_v4 = vunpack.i.l.bf16 %v2185_v3  ;;  %v1080_v32 = vsub.f32 %v2929_v1, %v1075_v46  ;;  %v2187_v9 = vunpack.i.h.bf16 %v2185_v3 }
 0x395   :  { %v2240_v58 = vpop.eup %2239 }
 0x396   :  { %v3034_v18 = vpop.eup %2241  ;;  %v1084_v8 = vmul.f32 1.442695, %v1080_v32  ;;  %2104 = vmatmul.msk.f32.gmra.mxu2 %vm521_vm11, %v2240_v58  ;;  %v1209_v61 = vsel %vm521_vm11, %v2240_v58, 0.0 }
 0x397   :  { %1507 = vmatpush.msra.mxu2 %v2186_v4  ;;  %2094 = vmatmul.msk.f32.vlgmr.msrb.gmra.mxu0 %vm521_vm11, %v3034_v18 }
 0x398   :  { %2243 = vpow2.f32 %v1084_v8  ;;  %1210 = vadd.xlane.f32.xlu1 %v1209_v61 }
 0x399   :  { %1508 = vmatpush.msra.mxu2 %v2187_v9 }
 0x39c   :  { %v1196_v62 = vpop.xlane.xlu1 %1195 }
 0x39d   :  { %v1199_v14 = vsub.f32 %v2940_v21, %v1196_v62 }
 0x39e   :  { %v3041_v1 = vpop.eup %2243 }
 0x39f   :  { %v1204_v45 = vmul.f32 1.442695, %v1199_v14  ;;  %2095 = vmatmul.msk.f32.gmra.mxu0 %vm521_vm11, %v3041_v1 }
 0x3a1   :  { %2245 = vpow2.f32 %v1204_v45 }
 0x3a2   :  { %662 = vadd.xlane.f32.xlu2 %v661_v15 }
 0x3a4   :  { %v1447_v16 = vpop.xlane.xlu1 %1446  ;;  %v3060_v53 = vpop.f32.mrf.mxu2 }
 0x3a5   :  { %v1454_v39 = vsub.f32 %v2951_v29, %v1447_v16 }
 0x3a7   :  { %v2246_v12 = vpop.eup %2245  ;;  %v1457_v24 = vmul.f32 1.442695, %v1454_v39 }
 0x3a8   :  { %2105 = vmatmul.msk.f32.gmra.mxu2 %vm521_vm11, %v2246_v12  ;;  %v1212_v21 = vsel %vm521_vm11, %v2246_v12, 0.0 }
 0x3a9   :  { %2247 = vpow2.f32 %v1457_v24  ;;  %1213 = vadd.xlane.f32.xlu1 %v1212_v21 }
 0x3aa   :  { %547 = vadd.xlane.f32.xlu2 %v546_v25 }
 0x3ab   :  { %v1323_v27 = vpop.xlane.xlu0 %1322 }
 0x3ac   :  { %v1450_v28 = vpop.xlane.xlu1 %1449  ;;  %v1328_v38 = vsub.f32 %v2966_v17, %v1323_v27  ;;  %v3068_v44 = vpop.f32.mrf.mxu2 }
 0x3ad   :  { %v1455_v51 = vsub.f32 %v2968_v43, %v1450_v28 }
 0x3ae   :  { %v1332_v35 = vmul.f32 1.442695, %v1328_v38  ;;  %v3054_v29 = vpop.f32.mrf.mxu0 }
 0x3af   :  { %v3056_v40 = vpop.eup %2247  ;;  %v1459_v31 = vmul.f32 1.442695, %v1455_v51 }
 0x3b0   :  { %2249 = vpow2.f32 %v1332_v35  ;;  %2121 = vmatmul.msk.f32.vlgmr.msra.gmra.mxu2 %vm521_vm11, %v3056_v40 }
 0x3b1   :  { %2251 = vpow2.f32 %v1459_v31 }
 0x3b5   :  { %v1453_v63 = vpop.xlane.xlu0 %1452 }
 0x3b6   :  { %v2250_v47 = vpop.eup %2249  ;;  %v1456_v33 = vsub.f32 %v2982_v48, %v1453_v63  ;;  %v3063_v17 = vpop.f32.mrf.mxu0 }
 0x3b7   :  { %v2252_v43 = vpop.eup %2251  ;;  %v1339_v36 = vsel %vm521_vm11, %v2250_v47, 0.0 }
 0x3b8   :  { %v1461_v37 = vmul.f32 1.442695, %v1456_v33  ;;  %2122 = vmatmul.msk.f32.gmra.mxu2 %vm521_vm11, %v2252_v43  ;;  %v1466_v41 = vsel %vm521_vm11, %v2252_v43, 0.0  ;;  %1340 = vadd.xlane.f32.xlu2 %v1339_v36 }
 0x3b9   :  { %1467 = vadd.xlane.f32.xlu0 %v1466_v41 }
 0x3ba   :  { %2253 = vpow2.f32 %v1461_v37 }
 0x3bd   :  { %v666_v52 = vpop.xlane.xlu0 %665 }
 0x3be   :  { %2255 = vrcp.f32 %v666_v52  ;;  %v3070_v55 = vpop.f32.mrf.mxu0 }
 0x3c0   :  { %v2254_v48 = vpop.eup %2253 }
 0x3c1   :  { %2123 = vmatmul.msk.f32.gmra.mxu2 %vm521_vm11, %v2254_v48  ;;  %v1469_v57 = vsel %vm521_vm11, %v2254_v48, 0.0 }
 0x3c2   :  { %1470 = vadd.xlane.f32.xlu0 %v1469_v57 }
 0x3c4   :  { %v2256_v42 = vpop.eup %2255  ;;  %v2190_v49 = vpop.permute.xlu1 %2189 }
 0x3c5   :  { %v714_v54 = vpop.f32.mrf.mxu2  ;;  %v2191_v56 = vunpack.i.l.bf16 %v2190_v49  ;;  %v793_v60 = vpop.xlane.xlu0 %792  ;;  %v2192_v3 = vunpack.i.h.bf16 %v2190_v49 }
 0x3c6   :  { %v719_v59 = vmul.f32 %v2256_v42, %v714_v54  ;;  %v3074_v0 = vpop.f32.mrf.mxu0  ;;  %2257 = vrcp.f32 %v793_v60 }
 0x3c7   :  { %1379 = vmatpush.msra.mxu0 %v2191_v56 }
 0x3c8   :  { %981 = vrot.lane.b32.xlu1 %v719_v59, %s2392_s30 }
 0x3c9   :  { %1380 = vmatpush.msra.mxu0 %v2192_v3  ;;  %v1091_v3 = vsel %vm521_vm11, %v3041_v1, 0.0 }
 0x3cc   :  { %v1078_v46 = vpop.xlane.xlu2 %1077  ;;  %v2258_v32 = vpop.eup %2257 }
 0x3cd   :  { %v1081_v4 = vsub.f32 %v2938_v20, %v1078_v46  ;;  %v920_v20 = vpop.xlane.xlu0 %919 }
 0x3ce   :  { %v838_v58 = vpop.f32.mrf.mxu0 }
 0x3cf   :  { %v845_v8 = vmul.f32 %v2258_v32, %v838_v58  ;;  %v1086_v61 = vmul.f32 1.442695, %v1081_v4 }
 0x3d1   :  { %2259 = vpow2.f32 %v1086_v61  ;;  %991 = vrot.lane.b32.xlu1 %v845_v8, %s2391_s3 }
 0x3d4   :  { %v1320_v9 = vpop.xlane.xlu2 %1319 }
 0x3d5   :  { %v1327_v62 = vsub.f32 %v2949_v19, %v1320_v9  ;;  %v3087_v19 = vpop.f32.mrf.mxu2 }
 0x3d7   :  { %v2260_v14 = vpop.eup %2259  ;;  %v1330_v45 = vmul.f32 1.442695, %v1327_v62 }
 0x3d8   :  { %2096 = vmatmul.msk.f32.gmra.mxu0 %vm521_vm11, %v2260_v14  ;;  %v1094_v60 = vsel %vm521_vm11, %v2260_v14, 0.0 }
 0x3d9   :  { %2261 = vpow2.f32 %v1330_v45 }
 0x3dc   :  { %v1349_v15 = vpop.permute.xlu2 %1348 }
 0x3dd   :  { %1381 = vmatpush.msra.mxu0 %v1349_v15  ;;  %v965_v27 = vpop.f32.mrf.mxu2 }
 0x3df   :  { %v3081_v16 = vpop.eup %2261 }
 0x3e0   :  { %2112 = vmatmul.msk.f32.vlgmr.msra.gmra.mxu0 %vm521_vm11, %v3081_v16 }
 0x3e5   :  { %v968_v35 = vpop.f32.mrf.mxu2 }
 0x3e8   :  { %2113 = vmatmul.msk.f32.gmra.mxu0 %vm521_vm11, %v2250_v47 }
 0x3ef   :  { %v1326_v39 = vpop.xlane.xlu1 %1325 }
 0x3f0   :  { %v1329_v12 = vsub.f32 %v3015_v22, %v1326_v39  ;;  %v1612_v39 = vld [vmem:[%s3450_s8 + $0x38] sm:$0xff] }
 0x3f1   :  { %1633 = vmatpush.msrb.mxu0 %v1612_v39 }
 0x3f2   :  { %v1334_v24 = vmul.f32 1.442695, %v1329_v12  ;;  %v1611_v12 = vld [vmem:[%s3450_s8 + $0x30] sm:$0xff] }
 0x3f3   :  { %1634 = vmatpush.msrb.mxu0 %v1611_v12 }
 0x3f4   :  { %2263 = vpow2.f32 %v1334_v24  ;;  %v1610_v24 = vld [vmem:[%s3450_s8 + $0x28] sm:$0xff] }
 0x3f5   :  { %1635 = vmatpush.msrb.mxu0 %v1610_v24 }
 0x3f6   :  { %v796_v21 = vpop.xlane.xlu0 %795 }
 0x3f7   :  { %v3091_v63 = vpop.xlane.xlu1 %544 }
 0x3fa   :  { %v2264_v25 = vpop.eup %2263 }
 0x3fb   :  { %2114 = vmatmul.msk.f32.gmra.mxu0 %vm521_vm11, %v2264_v25  ;;  %v1342_v28 = vsel %vm521_vm11, %v2264_v25, 0.0 }
 0x3fc   :  { %1343 = vadd.xlane.f32.xlu2 %v1342_v28  ;;  %v1608_v28 = vld [vmem:[%s3450_s8 + $0x18] sm:$0xff] }
 0x3fe   :  { %v923_v38 = vpop.xlane.xlu0 %922 }
 0x3ff   :  { %2265 = vrcp.f32 %v923_v38  ;;  %v841_v37 = vpop.f32.mrf.mxu0 }
 0x400   :  { %2267 = vrcp.f32 %v920_v20 }
 0x401   :  { %2269 = vrcp.f32 %v796_v21  ;;  %v1609_v21 = vld [vmem:[%s3450_s8 + $0x20] sm:$0xff] }
 0x402   :  { %1636 = vmatpush.msrb.mxu0 %v1609_v21 }
 0x404   :  { %1637 = vmatpush.msrb.mxu0 %v1608_v28 }
 0x405   :  { %v2266_v51 = vpop.eup %2265 }
 0x406   :  { %v973_v31 = vmul.f32 %v2266_v51, %v968_v35  ;;  %v2268_v47 = vpop.eup %2267  ;;  %v1607_v51 = vld [vmem:[%s3450_s8 + $0x10] sm:$0xff]  ;;  %v1606_v35 = vld [vmem:[%s3450_s8 + $0x8] sm:$0xff] }
 0x407   :  { %v3094_v33 = vpop.f32.mrf.mxu2  ;;  %v972_v43 = vmul.f32 %v2268_v47, %v965_v27  ;;  %v2270_v41 = vpop.eup %2269  ;;  %1638 = vmatpush.msrb.mxu0 %v1607_v51 }
 0x408   :  { %1005 = vrot.lane.b32.xlu1 %v973_v31, %s2389_s6  ;;  %v846_v57 = vmul.f32 %v2270_v41, %v841_v37  ;;  %v1605_v31 = vld [vmem:[%s3450_s8] sm:$0xff] }
 0x409   :  { %1639 = vmatpush.msrb.mxu0 %v1606_v35 }
 0x40b   :  { %v1211_v22 = vpop.xlane.xlu1 %1210  ;;  %1640 = vmatpush.msrb.mxu0 %v1605_v31 }
 0x40c   :  { %2271 = vrcp.f32 %v1211_v22 }
 0x412   :  { %v2272_v52 = vpop.eup %2271 }
 0x414   :  { %1003 = vrot.lane.b32.xlu2 %v972_v43, %s2389_s6  ;;  %v3101_v56 = vpop.f32.mrf.mxu0 }
 0x415   :  { %v663_v36 = vpop.xlane.xlu2 %662 }
 0x416   :  { %2273 = vrcp.f32 %v663_v36 }
 0x419   :  { %v1259_v48 = vpop.f32.mrf.mxu2 }
 0x41a   :  { %v1266_v42 = vmul.f32 %v2272_v52, %v1259_v48  ;;  %v1463_v48 = vsel %vm521_vm11, %v3056_v40, 0.0 }
 0x41c   :  { %v2274_v49 = vpop.eup %2273  ;;  %993 = vrot.lane.b32.xlu2 %v846_v57, %s2391_s3  ;;  %1527 = vrot.lane.b32.xlu1 %v1266_v42, %s2392_s30  ;;  %v3106_v46 = vpop.f32.mrf.mxu0 }
 0x41d   :  { %v718_v54 = vmul.f32 %v2274_v49, %v3068_v44  ;;  %v548_v58 = vpop.xlane.xlu2 %547  ;;  %v1214_v1 = vpop.xlane.xlu1 %1213 }
 0x41f   :  { %979 = vrot.lane.b32.xlu0 %v718_v54, %s2392_s30  ;;  %v658_v54 = vsel %vm521_vm11, %v2933_v5, 0.0  ;;  %v915_v5 = vsel %vm521_vm11, %v2992_v7, 0.0  ;;  %v1206_v7 = vsel %vm521_vm11, %v3024_v26, 0.0 }
 0x42b   :  { %v1262_v59 = vpop.f32.mrf.mxu2  ;;  %v1341_v62 = vpop.xlane.xlu2 %1340 }
 0x42c   :  { %v1468_v32 = vpop.xlane.xlu0 %1467 }
 0x42d   :  { %2275 = vrcp.f32 %v1468_v32 }
 0x42e   :  { %2277 = vrcp.f32 %v1341_v62 }
 0x42f   :  { %2279 = vrcp.f32 %v1214_v1 }
 0x433   :  { %v3108_v4 = vpop.f32.mrf.mxu2  ;;  %v2276_v61 = vpop.eup %2275 }
 0x434   :  { %v2278_v45 = vpop.eup %2277 }
 0x435   :  { %v2280_v25 = vpop.eup %2279  ;;  %v1471_v22 = vpop.xlane.xlu0 %1470 }
 0x436   :  { %v1267_v27 = vmul.f32 %v2280_v25, %v1262_v59 }
 0x43a   :  { %v982_v57 = vpop.permute.xlu1 %981 }
 0x43b   :  { %v1513_v8 = vpop.f32.mrf.mxu2 }
 0x43c   :  { %v1520_v9 = vmul.f32 %v2276_v61, %v1513_v8 }
 0x444   :  { %v1516_v37 = vpop.f32.mrf.mxu2 }
 0x445   :  { %1095 = vadd.xlane.f32.xlu2 %v1094_v60 }
 0x449   :  { %1092 = vadd.xlane.f32.xlu0 %v1091_v3  ;;  %v992_v3 = vpop.permute.xlu1 %991 }
 0x455   :  { %v3110_v44 = vpop.f32.mrf.mxu0 }
 0x45d   :  { %1664 = vrot.lane.b32.xlu2 %v2662_v13, %s2394_s16  ;;  %v3114_v14 = vpop.f32.mrf.mxu0  ;;  %1551 = vrot.lane.b32.xlu0 %v1520_v9, %s2389_s6 }
 0x465   :  { %v1386_v15 = vpop.f32.mrf.mxu0  ;;  %1666 = vrot.lane.b32.xlu0 %v2704_v50, %s2394_s16 }
 0x466   :  { %v1393_v20 = vmul.f32 %v2278_v45, %v1386_v15  ;;  %v1088_v45 = vsel %vm521_vm11, %v3034_v18, 0.0  ;;  %v1336_v15 = vsel %vm521_vm11, %v3081_v16, 0.0 }
 0x468   :  { %1539 = vrot.lane.b32.xlu1 %v1393_v20, %s2391_s3  ;;  %v540_v20 = vsel %vm521_vm11, %v2953_v30, 0.0 }
 0x46f   :  { %v1344_v38 = vpop.xlane.xlu2 %1343 }
 0x470   :  { %1529 = vrot.lane.b32.xlu1 %v1267_v27, %s2392_s30  ;;  %2281 = vrcp.f32 %v1344_v38 }
 0x471   :  { %2283 = vrcp.f32 %v1471_v22 }
 0x472   :  { %2285 = vrcp.f32 %v3091_v63 }
 0x473   :  { %2287 = vrcp.f32 %v548_v58 }
 0x476   :  { %v2282_v47 = vpop.eup %2281 }
 0x477   :  { %v2284_v41 = vpop.eup %2283  ;;  %v1004_v42 = vpop.permute.xlu2 %1003 }
 0x478   :  { %v1389_v43 = vpop.f32.mrf.mxu0  ;;  %v1521_v52 = vmul.f32 %v2284_v41, %v1516_v37  ;;  %v2286_v49 = vpop.eup %2285 }
 0x479   :  { %v1394_v36 = vmul.f32 %v2282_v47, %v1389_v43  ;;  %v588_v59 = vmul.f32 %v2286_v49, %v3063_v17  ;;  %v2288_v8 = vpop.eup %2287 }
 0x47a   :  { %v589_v58 = vmul.f32 %v2288_v8, %v3070_v55  ;;  %v1006_v62 = vpop.permute.xlu1 %1005  ;;  %v788_v55 = vsel %vm521_vm11, %v2990_v6, 0.0 }
 0x47b   :  { %1541 = vrot.lane.b32.xlu1 %v1394_v36, %s2391_s3 }
 0x47c   :  { %v1012_v17 = vsel %vm479_vm10, %v589_v58, %v982_v57  ;;  %v2331_v58 = vld [vmem:[%s3443_s1 + $0x10] sm:$0xff] }
 0x47f   :  { %v994_v61 = vpop.permute.xlu2 %993 }
 0x480   :  { %v1015_v9 = vsel %vm150_vm0, %v1012_v17, %v994_v61 }
 0x481   :  { %v1019_v1 = vsel %vm1016_vm13, %v1015_v9, %v1006_v62 }
 0x483   :  { %1553 = vrot.lane.b32.xlu1 %v1521_v52, %s2389_s6 }
 0x486   :  { %1464 = vadd.xlane.f32.xlu2 %v1463_v48  ;;  %v2329_v48 = vld [vmem:[%s3443_s1] sm:$0xff] }
 0x48e   :  { %v1528_v18 = vpop.permute.xlu1 %1527 }
 0x48f   :  { %659 = vadd.xlane.f32.xlu0 %v658_v54 }
 0x491   :  { %v980_v60 = vpop.permute.xlu0 %979 }
 0x492   :  { %v1011_v32 = vsel %vm479_vm10, %v588_v59, %v980_v60 }
 0x493   :  { %v1014_v40 = vsel %vm150_vm0, %v1011_v32, %v992_v3  ;;  %v2330_v3 = vld [vmem:[%s3443_s1 + $0x8] sm:$0xff] }
 0x494   :  { %v1018_v63 = vsel %vm1016_vm13, %v1014_v40, %v1004_v42 }
 0x495   :  { %2126 = vmatmul.msk.f32.vlgmr.msrb.gmra.mxu0 %vm1575_vm12, %v1018_v63 }
 0x497   :  { %916 = vadd.xlane.f32.xlu0 %v915_v5 }
 0x49d   :  { %2127 = vmatmul.msk.f32.gmra.mxu0 %vm1575_vm12, %v1019_v1  ;;  %v2332_v1 = vld [vmem:[%s3443_s1 + $0x18] sm:$0xff] }
 0x49f   :  { %1089 = vadd.xlane.f32.xlu0 %v1088_v45 }
 0x4ad   :  { %789 = vadd.xlane.f32.xlu1 %v788_v55 }
 0x4b5   :  { %1207 = vadd.xlane.f32.xlu1 %v1206_v7 }
 0x4b8   :  { %v1096_v28 = vpop.xlane.xlu2 %1095 }
 0x4bc   :  { %v1093_v39 = vpop.xlane.xlu0 %1092 }
 0x4bd   :  { %1337 = vadd.xlane.f32.xlu1 %v1336_v15  ;;  %2289 = vrcp.f32 %v1093_v39 }
 0x4be   :  { %2291 = vrcp.f32 %v1096_v28 }
 0x4c0   :  { %v1665_v41 = vpop.permute.xlu2 %1664 }
 0x4c3   :  { %v2290_v12 = vpop.eup %2289 }
 0x4c4   :  { %v1136_v24 = vmul.f32 %v2290_v12, %v3106_v46  ;;  %v2292_v38 = vpop.eup %2291 }
 0x4c5   :  { %541 = vadd.xlane.f32.xlu1 %v540_v20  ;;  %v1137_v51 = vmul.f32 %v2292_v38, %v3110_v44 }
 0x4c6   :  { %v1559_v6 = vsel %vm479_vm10, %v1136_v24, %v1528_v18 }
 0x4cf   :  { %v1552_v25 = vpop.permute.xlu0 %1551 }
 0x4d7   :  { %v1667_v47 = vpop.permute.xlu0 %1666 }
 0x4da   :  { %v1540_v21 = vpop.permute.xlu1 %1539 }
 0x4db   :  { %v1562_v26 = vsel %vm150_vm0, %v1559_v6, %v1540_v21 }
 0x4dc   :  { %v1565_v27 = vsel %vm1016_vm13, %v1562_v26, %v1552_v25 }
 0x4dd   :  { %2128 = vmatmul.msk.f32.gmra.mxu0 %vm1575_vm12, %v1565_v27 }
 0x4e2   :  { %v1530_v16 = vpop.permute.xlu1 %1529 }
 0x4e3   :  { %v1560_v35 = vsel %vm479_vm10, %v1137_v51, %v1530_v16 }
 0x4ed   :  { %v1542_v30 = vpop.permute.xlu1 %1541 }
 0x4ee   :  { %v1563_v46 = vsel %vm150_vm0, %v1560_v35, %v1542_v30 }
 0x4f5   :  { %v1554_v31 = vpop.permute.xlu1 %1553 }
 0x4f6   :  { %v1566_v22 = vsel %vm1016_vm13, %v1563_v46, %v1554_v31 }
 0x4f7   :  { %2129 = vmatmul.msk.f32.gmra.mxu0 %vm1575_vm12, %v1566_v22 }
 0x4f9   :  { %v1465_v25 = vpop.xlane.xlu2 %1464 }
 0x502   :  { %v660_v43 = vpop.xlane.xlu0 %659 }
 0x503   :  { %2293 = vrcp.f32 %v660_v43 }
 0x509   :  { %v2294_v36 = vpop.eup %2293 }
 0x50a   :  { %v717_v37 = vmul.f32 %v2294_v36, %v3060_v53  ;;  %v917_v49 = vpop.xlane.xlu0 %916  ;;  %v1572_v36 = vld [vmem:[%s3449_s7 + $0x28] sm:$0xff] }
 0x50b   :  { %2295 = vrcp.f32 %v917_v49  ;;  %v1568_v49 = vld [vmem:[%s3449_s7 + $0x8] sm:$0xff] }
 0x50c   :  { %977 = vrot.lane.b32.xlu2 %v717_v37, %s2392_s30 }
 0x511   :  { %v2296_v59 = vpop.eup %2295 }
 0x512   :  { %v1642_v52 = vpop.f32.mrf.mxu0  ;;  %v971_v60 = vmul.f32 %v2296_v59, %v3087_v19  ;;  %v3244_v22 = vpop.xlane.xlu0 %1089 }
 0x513   :  { %v1670_v44 = vmul.f32 %v1665_v41, %v1642_v52 }
 0x515   :  { %v3189_v57 = vadd.f32 %v2329_v48, %v1670_v44  ;;  %v1570_v44 = vld [vmem:[%s3449_s7 + $0x18] sm:$0xff] }
 0x517   :  { %v1738_v42 = vsel %vm150_vm0, %v3189_v57, 0.0 }
 0x518   :  { %1739 = vadd.xlane.f32.xlu1 %v1738_v42  ;;  %v1569_v42 = vld [vmem:[%s3449_s7 + $0x10] sm:$0xff] }
 0x51a   :  { %v1645_v54 = vpop.f32.mrf.mxu0 }
 0x51b   :  { %v1671_v53 = vmul.f32 %v1665_v41, %v1645_v54  ;;  %v1571_v41 = vld [vmem:[%s3449_s7 + $0x20] sm:$0xff] }
 0x51c   :  { %v1567_v54 = vld [vmem:[%s3449_s7] sm:$0xff] }
 0x51d   :  { %v3197_v32 = vadd.f32 %v2330_v3, %v1671_v53 }
 0x51f   :  { %v1741_v8 = vsel %vm150_vm0, %v3197_v32, 0.0 }
 0x520   :  { %v790_v5 = vpop.xlane.xlu1 %789 }
 0x521   :  { %2297 = vrcp.f32 %v790_v5 }
 0x527   :  { %v2298_v20 = vpop.eup %2297 }
 0x528   :  { %v1208_v17 = vpop.xlane.xlu1 %1207  ;;  %v844_v12 = vmul.f32 %v2298_v20, %v3074_v0  ;;  %v1848_v20 = vld [vmem:[%s3451_s9] sm:$0xff] }
 0x529   :  { %2299 = vrcp.f32 %v1208_v17 }
 0x52a   :  { %2301 = vrcp.f32 %v1465_v25 }
 0x52f   :  { %v2300_v27 = vpop.eup %2299 }
 0x530   :  { %v1338_v55 = vpop.xlane.xlu1 %1337  ;;  %v1265_v0 = vmul.f32 %v2300_v27, %v3094_v33  ;;  %v2302_v51 = vpop.eup %2301 }
 0x531   :  { %1001 = vrot.lane.b32.xlu1 %v971_v60, %s2389_s6  ;;  %v1519_v46 = vmul.f32 %v2302_v51, %v3108_v4  ;;  %2303 = vrcp.f32 %v1338_v55  ;;  %v1574_v4 = vld [vmem:[%s3449_s7 + $0x38] sm:$0xff] }
 0x532   :  { %1590 = vmatpush.msrb.mxu3 %v1574_v4 }
 0x535   :  { %1742 = vadd.xlane.f32.xlu2 %v1741_v8 }
 0x537   :  { %v2304_v33 = vpop.eup %2303 }
 0x538   :  { %v3216_v15 = vpop.xlane.xlu1 %541  ;;  %v1392_v31 = vmul.f32 %v2304_v33, %v3114_v14  ;;  %v1573_v14 = vld [vmem:[%s3449_s7 + $0x30] sm:$0xff] }
 0x539   :  { %1591 = vmatpush.msrb.mxu3 %v1573_v14  ;;  %2305 = vrcp.f32 %v3216_v15  ;;  %v1849_v15 = vld [vmem:[%s3451_s9 + $0x8] sm:$0xff] }
 0x53b   :  { %1592 = vmatpush.msrb.mxu3 %v1572_v36 }
 0x53d   :  { %1593 = vmatpush.msrb.mxu3 %v1571_v41 }
 0x53f   :  { %1594 = vmatpush.msrb.mxu3 %v1570_v44 }
 0x541   :  { %1595 = vmatpush.msrb.mxu3 %v1569_v42 }
 0x543   :  { %1596 = vmatpush.msrb.mxu3 %v1568_v49 }
 0x545   :  { %1597 = vmatpush.msrb.mxu3 %v1567_v54 }
 0x55a   :  { %v1648_v40 = vpop.f32.mrf.mxu0 }
 0x55b   :  { %v1672_v63 = vmul.f32 %v1667_v47, %v1648_v40  ;;  %v2306_v40 = vpop.eup %2305 }
 0x55d   :  { %v3205_v61 = vadd.f32 %v2331_v58, %v1672_v63  ;;  %v587_v63 = vmul.f32 %v2306_v40, %v3054_v29  ;;  %v1850_v29 = vld [vmem:[%s3451_s9 + $0x10] sm:$0xff] }
 0x55f   :  { %v1744_v19 = vsel %vm150_vm0, %v3205_v61, 0.0 }
 0x560   :  { %1745 = vadd.xlane.f32.xlu0 %v1744_v19 }
 0x566   :  { %v978_v26 = vpop.permute.xlu2 %977 }
 0x567   :  { %v1010_v58 = vsel %vm479_vm10, %v587_v63, %v978_v26 }
 0x574   :  { %v1651_v9 = vpop.f32.mrf.mxu0 }
 0x575   :  { %v1673_v62 = vmul.f32 %v1667_v47, %v1651_v9 }
 0x577   :  { %v3212_v45 = vadd.f32 %v2332_v1, %v1673_v62 }
 0x579   :  { %v1747_v7 = vsel %vm150_vm0, %v3212_v45, 0.0 }
 0x57a   :  { %1748 = vadd.xlane.f32.xlu0 %v1747_v7  ;;  %v1851_v7 = vld [vmem:[%s3451_s9 + $0x18] sm:$0xff] }
 0x57b   :  { %1880 = vmatpush.msra.mxu3 %v1851_v7 }
 0x57d   :  { %1881 = vmatpush.msra.mxu3 %v1850_v29 }
 0x57f   :  { %1882 = vmatpush.msra.mxu3 %v1849_v15 }
 0x581   :  { %1883 = vmatpush.msra.mxu3 %v1848_v20 }
 0x58b   :  { %v1740_v39 = vpop.xlane.xlu1 %1739 }
 0x58c   :  { %v1750_v18 = vmul.f32 %v1740_v39, %v2515_v34 }
 0x58e   :  { %v3221_v24 = vsub.f32 %v3189_v57, %v1750_v18  ;;  %989 = vrot.lane.b32.xlu0 %v844_v12, %s2391_s3 }
 0x590   :  { %v1758_v6 = vmul.f32 %v3221_v24, %v3221_v24 }
 0x592   :  { %v1762_v21 = vsel %vm150_vm0, %v1758_v6, 0.0 }
 0x593   :  { %1763 = vadd.xlane.f32.xlu2 %v1762_v21 }
 0x5a3   :  { %v1002_v5 = vpop.permute.xlu1 %1001 }
 0x5a8   :  { %v1743_v16 = vpop.xlane.xlu2 %1742 }
 0x5a9   :  { %v1751_v28 = vmul.f32 %v1743_v16, %v2515_v34 }
 0x5ab   :  { %v3230_v30 = vsub.f32 %v3197_v32, %v1751_v28  ;;  %1525 = vrot.lane.b32.xlu2 %v1265_v0, %s2392_s30 }
 0x5ad   :  { %v1759_v38 = vmul.f32 %v3230_v30, %v3230_v30 }
 0x5af   :  { %v1765_v35 = vsel %vm150_vm0, %v1759_v38, 0.0 }
 0x5b0   :  { %1766 = vadd.xlane.f32.xlu1 %v1765_v35 }
 0x5b3   :  { %1549 = vrot.lane.b32.xlu2 %v1519_v46, %s2389_s6  ;;  %s2006_s6 = sshll.u32 %s3455_s13, 4  ;;  %s2007_s6 = int_to_ptr.hbm [resolvable:$true] %s2006_s6 }
 0x5bb   :  { %1826 = vrot.lane.b32.xlu2 %v2662_v13, %s2388_s17 }
 0x5c3   :  { %1836 = vrot.lane.b32.xlu2 %v2562_v2, %s2391_s3 }
 0x5c9   :  { %1537 = vrot.lane.b32.xlu1 %v1392_v31, %s2391_s3 }
 0x5cb   :  { %1828 = vrot.lane.b32.xlu2 %v2704_v50, %s2388_s17 }
 0x5d3   :  { %v1746_v47 = vpop.xlane.xlu0 %1745  ;;  %1838 = vrot.lane.b32.xlu2 %v2657_v11, %s2391_s3 }
 0x5d4   :  { %v1752_v43 = vmul.f32 %v1746_v47, %v2515_v34 }
 0x5d6   :  { %v3261_v37 = vsub.f32 %v3205_v61, %v1752_v43 }
 0x5d8   :  { %v1760_v52 = vmul.f32 %v3261_v37, %v3261_v37 }
 0x5da   :  { %v1768_v48 = vsel %vm150_vm0, %v1760_v52, 0.0 }
 0x5db   :  { %1769 = vadd.xlane.f32.xlu0 %v1768_v48  ;;  %1656 = vrot.lane.b32.xlu2 %v2673_v23, %s2394_s16 }
 0x5ed   :  { %v1749_v59 = vpop.xlane.xlu0 %1748 }
 0x5ee   :  { %v1753_v53 = vmul.f32 %v1749_v59, %v2515_v34 }
 0x5ef   :  { %1654 = vrot.lane.b32.xlu0 %v2655_v10, %s2394_s16 }
 0x5f0   :  { %v3287_v60 = vsub.f32 %v3212_v45, %v1753_v53 }
 0x5f2   :  { %v1761_v3 = vmul.f32 %v3287_v60, %v3287_v60 }
 0x5f4   :  { %v1771_v8 = vsel %vm150_vm0, %v1761_v3, 0.0 }
 0x5f5   :  { %1772 = vadd.xlane.f32.xlu1 %v1771_v8 }
 0x600   :  { %v990_v19 = vpop.permute.xlu0 %989 }
 0x601   :  { %v1013_v17 = vsel %vm150_vm0, %v1010_v58, %v990_v19 }
 0x602   :  { %v1017_v9 = vsel %vm1016_vm13, %v1013_v17, %v1002_v5 }
 0x603   :  { %2124 = vmatmul.msk.f32.vlgmr.msrb.gmra.mxu3 %vm1575_vm12, %v1017_v9 }
 0x606   :  { %v1764_v62 = vpop.xlane.xlu2 %1763 }
 0x607   :  { %v1774_v1 = vmul.f32 %v1764_v62, %v2515_v34 }
 0x609   :  { %v1778_v55 = vadd.f32 1e-05, %v1774_v1 }
 0x60b   :  { %2307 = vrsqrt.f32 %v1778_v55  ;;  %vm1788_vm15 = vweird.f32 %v1778_v55 }
 0x60e   :  { %v1526_v39 = vpop.permute.xlu2 %1525 }
 0x611   :  { %v2308_v12 = vpop.eup %2307 }
 0x612   :  { %v1783_v25 = vmul.f32 %v2308_v12, %v1778_v55  ;;  %vm1789_vm14 = vweird.f32 %v2308_v12 }
 0x613   :  { %vm1790_vm1 = vmor %vm1788_vm15, %vm1789_vm14 }
 0x614   :  { %v1784_v26 = vmul.f32 %v2308_v12, %v1783_v25 }
 0x616   :  { %v1550_v27 = vpop.permute.xlu2 %1549  ;;  %v1785_v28 = vmul.f32 0.5, %v1784_v26 }
 0x618   :  { %v1786_v51 = vsub.f32 1.5, %v1785_v28 }
 0x61a   :  { %v1787_v33 = vmul.f32 %v2308_v12, %v1786_v51  ;;  %v2333_v51 = vld [vmem:[%s3442_s0] sm:$0xff] }
 0x61c   :  { %v1791_v14 = vsel %vm1790_vm1, %v2308_v12, %v1787_v33  ;;  %v1947_v33 = vld [vmem:[%s3453_s11 + $0x70] sm:$0xff] }
 0x61d   :  { %v1822_v44 = vmul.f32 %v1791_v14, %v3221_v24  ;;  %v1941_v14 = vld [vmem:[%s3453_s11 + $0x40] sm:$0xff] }
 0x61e   :  { %v1827_v31 = vpop.permute.xlu2 %1826 }
 0x61f   :  { %v1832_v42 = vmul.f32 %v1827_v31, %v1822_v44  ;;  %v1936_v44 = vld [vmem:[%s3453_s11 + $0x18] sm:$0xff] }
 0x623   :  { %v1767_v18 = vpop.xlane.xlu1 %1766 }
 0x624   :  { %v1775_v6 = vmul.f32 %v1767_v18, %v2515_v34 }
 0x626   :  { %v1779_v21 = vadd.f32 1e-05, %v1775_v6 }
 0x628   :  { %2309 = vrsqrt.f32 %v1779_v21  ;;  %vm1798_vm3 = vweird.f32 %v1779_v21 }
 0x629   :  { %2311 = vrcp.f32 %v3244_v22 }
 0x62e   :  { %v2310_v16 = vpop.eup %2309 }
 0x62f   :  { %v1793_v0 = vmul.f32 %v2310_v16, %v1779_v21  ;;  %v2312_v46 = vpop.eup %2311  ;;  %vm1799_vm2 = vweird.f32 %v2310_v16 }
 0x630   :  { %v1135_v4 = vmul.f32 %v2312_v46, %v3101_v56  ;;  %vm1800_vm4 = vmor %vm1798_vm3, %vm1799_vm2  ;;  %v1837_v56 = vpop.permute.xlu2 %1836 }
 0x631   :  { %v1794_v38 = vmul.f32 %v2310_v16, %v1793_v0  ;;  %v1842_v54 = vadd.f32 %v1837_v56, %v1832_v42 }
 0x632   :  { %v1558_v43 = vsel %vm479_vm10, %v1135_v4, %v1526_v39  ;;  %v1945_v4 = vld [vmem:[%s3453_s11 + $0x60] sm:$0xff] }
 0x633   :  { %v1795_v35 = vmul.f32 0.5, %v1794_v38 }
 0x635   :  { %v1796_v47 = vsub.f32 1.5, %v1795_v35 }
 0x637   :  { %v1797_v52 = vmul.f32 %v2310_v16, %v1796_v47  ;;  %v1943_v47 = vld [vmem:[%s3453_s11 + $0x50] sm:$0xff] }
 0x638   :  { %v1829_v19 = vpop.permute.xlu2 %1828 }
 0x639   :  { %v1801_v48 = vsel %vm1800_vm4, %v2310_v16, %v1797_v52  ;;  %v1938_v52 = vld [vmem:[%s3453_s11 + $0x28] sm:$0xff] }
 0x63a   :  { %v1823_v49 = vmul.f32 %v1801_v48, %v3230_v30  ;;  %v1935_v48 = vld [vmem:[%s3453_s11 + $0x10] sm:$0xff] }
 0x63b   :  { %v1538_v36 = vpop.permute.xlu1 %1537 }
 0x63c   :  { %v1561_v41 = vsel %vm150_vm0, %v1558_v43, %v1538_v36  ;;  %v1833_v59 = vmul.f32 %v1827_v31, %v1823_v49  ;;  %v1946_v31 = vld [vmem:[%s3453_s11 + $0x68] sm:$0xff]  ;;  %v1940_v36 = vld [vmem:[%s3453_s11 + $0x38] sm:$0xff] }
 0x63d   :  { %v1564_v22 = vsel %vm1016_vm13, %v1561_v41, %v1550_v27  ;;  %v1942_v43 = vld [vmem:[%s3453_s11 + $0x48] sm:$0xff]  ;;  %v1939_v41 = vld [vmem:[%s3453_s11 + $0x30] sm:$0xff] }
 0x63e   :  { %2125 = vmatmul.msk.f32.gmra.mxu3 %vm1575_vm12, %v1564_v22  ;;  %v1843_v53 = vadd.f32 %v1837_v56, %v1833_v59  ;;  %v1937_v22 = vld [vmem:[%s3453_s11 + $0x20] sm:$0xff]  ;;  %v1934_v56 = vld [vmem:[%s3453_s11 + $0x8] sm:$0xff] }
 0x63f   :  { %v1933_v59 = vld [vmem:[%s3453_s11] sm:$0xff] }
 0x640   :  { %v1839_v55 = vpop.permute.xlu2 %1838 }
 0x646   :  { %2130 = vmatmul.msk.f32.vlgmr.msra.gmra.mxu3 %vm150_vm0, %v1842_v54 }
 0x648   :  { %v1657_v42 = vpop.permute.xlu2 %1656 }
 0x64e   :  { %v1770_v3 = vpop.xlane.xlu0 %1769  ;;  %2131 = vmatmul.msk.f32.gmra.mxu3 %vm150_vm0, %v1843_v53  ;;  %v2334_v53 = vld [vmem:[%s3442_s0 + $0x8] sm:$0xff] }
 0x64f   :  { %v1776_v8 = vmul.f32 %v1770_v3, %v2515_v34 }
 0x651   :  { %v1780_v24 = vadd.f32 1e-05, %v1776_v8 }
 0x653   :  { %2313 = vrsqrt.f32 %v1780_v24  ;;  %vm1808_vm6 = vweird.f32 %v1780_v24 }
 0x659   :  { %v2314_v40 = vpop.eup %2313 }
 0x65a   :  { %v1803_v63 = vmul.f32 %v2314_v40, %v1780_v24  ;;  %vm1809_vm5 = vweird.f32 %v2314_v40  ;;  %v2193_v24 = vld [vmem:[%s3452_s10] ss:$0 sm:$0xff] }
 0x65b   :  { %vm1810_vm7 = vmor %vm1808_vm6, %vm1809_vm5 }
 0x65c   :  { %v1804_v58 = vmul.f32 %v2314_v40, %v1803_v63 }
 0x65e   :  { %v1805_v5 = vmul.f32 0.5, %v1804_v58 }
 0x660   :  { %v1806_v17 = vsub.f32 1.5, %v1805_v5 }
 0x661   :  { %v1655_v28 = vpop.permute.xlu0 %1654 }
 0x662   :  { %v1807_v30 = vmul.f32 %v2314_v40, %v1806_v17 }
 0x664   :  { %v1811_v9 = vsel %vm1810_vm7, %v2314_v40, %v1807_v30 }
 0x665   :  { %v1824_v62 = vmul.f32 %v1811_v9, %v3261_v37 }
 0x667   :  { %v1834_v1 = vmul.f32 %v1829_v19, %v1824_v62 }
 0x668   :  { %v1773_v7 = vpop.xlane.xlu1 %1772 }
 0x669   :  { %v1777_v29 = vmul.f32 %v1773_v7, %v2515_v34  ;;  %v1844_v15 = vadd.f32 %v1839_v55, %v1834_v1 }
 0x66b   :  { %v1781_v20 = vadd.f32 1e-05, %v1777_v29  ;;  %2132 = vmatmul.msk.f32.gmra.mxu3 %vm150_vm0, %v1844_v15 }
 0x66d   :  { %2315 = vrsqrt.f32 %v1781_v20  ;;  %vm1818_vm9 = vweird.f32 %v1781_v20 }
 0x673   :  { %v2316_v39 = vpop.eup %2315 }
 0x674   :  { %v1813_v18 = vmul.f32 %v2316_v39, %v1781_v20  ;;  %vm1819_vm8 = vweird.f32 %v2316_v39 }
 0x675   :  { %vm1820_vm10 = vmor %vm1818_vm9, %vm1819_vm8 }
 0x676   :  { %v1814_v12 = vmul.f32 %v2316_v39, %v1813_v18 }
 0x678   :  { %v1815_v6 = vmul.f32 0.5, %v1814_v12 }
 0x67a   :  { %v1816_v21 = vsub.f32 1.5, %v1815_v6 }
 0x67c   :  { %v1817_v25 = vmul.f32 %v2316_v39, %v1816_v21 }
 0x67e   :  { %v1821_v37 = vsel %vm1820_vm10, %v2316_v39, %v1817_v25 }
 0x67f   :  { %v1825_v26 = vmul.f32 %v1821_v37, %v3287_v60  ;;  %v1948_v60 = vld [vmem:[%s3453_s11 + $0x78] sm:$0xff] }
 0x680   :  { %1953 = vmatpush.msra.mxu1 %v1948_v60 }
 0x681   :  { %v1835_v27 = vmul.f32 %v1829_v19, %v1825_v26 }
 0x682   :  { %1954 = vmatpush.msra.mxu1 %v1947_v33 }
 0x683   :  { %v1845_v16 = vadd.f32 %v1839_v55, %v1835_v27 }
 0x684   :  { %1955 = vmatpush.msra.mxu1 %v1946_v31 }
 0x685   :  { %2133 = vmatmul.msk.f32.gmra.mxu3 %vm150_vm0, %v1845_v16 }
 0x686   :  { %v1599_v0 = vpop.f32.mrf.mxu3  ;;  %1956 = vmatpush.msra.mxu1 %v1945_v4 }
 0x687   :  { %v1660_v38 = vmul.f32 %v1655_v28, %v1599_v0 }
 0x689   :  { %v3331_v35 = vadd.f32 %v2333_v51, %v1660_v38 }
 0x68b   :  { %v1678_v46 = vsel %vm150_vm0, %v3331_v35, 0.0 }
 0x68c   :  { %1679 = vadd.xlane.f32.xlu2 %v1678_v46 }
 0x6a4   :  { %1724 = vrot.lane.b32.xlu2 %v2673_v23, %s2388_s17  ;;  %v1944_v23 = vld [vmem:[%s3453_s11 + $0x58] sm:$0xff]  ;;  %s2395_s11 = smov [#allocation4]  }
 0x6a5   :  { %1957 = vmatpush.msra.mxu1 %v1944_v23 }
 0x6a7   :  { %1958 = vmatpush.msra.mxu1 %v1943_v47 }
 0x6a9   :  { %1959 = vmatpush.msra.mxu1 %v1942_v43 }
 0x6ab   :  { %1960 = vmatpush.msra.mxu1 %v1941_v14 }
 0x6ad   :  { %1961 = vmatpush.msra.mxu1 %v1940_v36 }
 0x6af   :  { %1962 = vmatpush.msra.mxu1 %v1939_v41 }
 0x6b1   :  { %1963 = vmatpush.msra.mxu1 %v1938_v52 }
 0x6b3   :  { %1964 = vmatpush.msra.mxu1 %v1937_v22 }
 0x6b5   :  { %1965 = vmatpush.msra.mxu1 %v1936_v44 }
 0x6b7   :  { %1966 = vmatpush.msra.mxu1 %v1935_v48 }
 0x6b9   :  { %1967 = vmatpush.msra.mxu1 %v1934_v56 }
 0x6bb   :  { %1968 = vmatpush.msra.mxu1 %v1933_v59 }
 0x6c1   :  { %v1602_v49 = vpop.f32.mrf.mxu3 }
 0x6c2   :  { %v1661_v54 = vmul.f32 %v1657_v42, %v1602_v49 }
 0x6c4   :  { %v3388_v3 = vadd.f32 %v2334_v53, %v1661_v54 }
 0x6c6   :  { %v1681_v8 = vsel %vm150_vm0, %v3388_v3, 0.0 }
 0x6c7   :  { %1682 = vadd.xlane.f32.xlu1 %v1681_v8 }
 0x6c9   :  { %v1885_v40 = vpop.f32.mrf.mxu3 }
 0x6ca   :  { %v1886_v63 = vadd.f32 %v2193_v24, %v1885_v40 }
 0x6cc   :  { %v1897_v58 = vmul.f32 %v1886_v63, %v1886_v63 }
 0x6ce   :  { %v1901_v19 = vmul.f32 %v1897_v58, %v1886_v63 }
 0x6d0   :  { %v1905_v5 = vmul.f32 0.044715, %v1901_v19 }
 0x6d1   :  { %v1888_v17 = vpop.f32.mrf.mxu3 }
 0x6d2   :  { %v1909_v30 = vadd.f32 %v1905_v5, %v1886_v63  ;;  %v1889_v9 = vadd.f32 %v2193_v24, %v1888_v17 }
 0x6d4   :  { %v1913_v62 = vmul.f32 0.7978846, %v1909_v30  ;;  %v1898_v1 = vmul.f32 %v1889_v9, %v1889_v9 }
 0x6d6   :  { %2317 = vtanh.f32 %v1913_v62  ;;  %v1902_v55 = vmul.f32 %v1898_v1, %v1889_v9 }
 0x6d8   :  { %v1906_v7 = vmul.f32 0.044715, %v1902_v55 }
 0x6da   :  { %v1910_v29 = vadd.f32 %v1906_v7, %v1889_v9 }
 0x6dc   :  { %v2318_v15 = vpop.eup %2317  ;;  %v1914_v20 = vmul.f32 0.7978846, %v1910_v29 }
 0x6dd   :  { %v1921_v39 = vadd.f32 1.0, %v2318_v15 }
 0x6de   :  { %2319 = vtanh.f32 %v1914_v20 }
 0x6df   :  { %v1925_v18 = vmul.f32 0.5, %v1921_v39 }
 0x6e1   :  { %v1929_v12 = vmul.f32 %v1925_v18, %v1886_v63 }
 0x6e3   :  { %1969 = vmatmul.f32.vlgmr.msra.gmra.mxu1 %v1929_v12 }
 0x6e4   :  { %v2320_v6 = vpop.eup %2319 }
 0x6e5   :  { %v1922_v21 = vadd.f32 1.0, %v2320_v6 }
 0x6e7   :  { %v1926_v25 = vmul.f32 0.5, %v1922_v21 }
 0x6e9   :  { %v1930_v37 = vmul.f32 %v1926_v25, %v1889_v9 }
 0x6eb   :  { %1972 = vmatmul.f32.gmra.mxu1 %v1930_v37 }
 0x6ee   :  { %v1891_v26 = vpop.f32.mrf.mxu3 }
 0x6ef   :  { %v1892_v27 = vadd.f32 %v2193_v24, %v1891_v26 }
 0x6f1   :  { %v1899_v16 = vmul.f32 %v1892_v27, %v1892_v27 }
 0x6f3   :  { %v1903_v28 = vmul.f32 %v1899_v16, %v1892_v27 }
 0x6f5   :  { %v1907_v0 = vmul.f32 0.044715, %v1903_v28 }
 0x6f7   :  { %v1911_v38 = vadd.f32 %v1907_v0, %v1892_v27 }
 0x6f9   :  { %v1915_v51 = vmul.f32 0.7978846, %v1911_v38 }
 0x6fb   :  { %2321 = vtanh.f32 %v1915_v51 }
 0x6ff   :  { %v1680_v46 = vpop.xlane.xlu2 %1679 }
 0x700   :  { %v1684_v60 = vmul.f32 %v1680_v46, %v2515_v34 }
 0x701   :  { %v2322_v33 = vpop.eup %2321 }
 0x702   :  { %v3397_v31 = vsub.f32 %v3331_v35, %v1684_v60  ;;  %v1923_v4 = vadd.f32 1.0, %v2322_v33 }
 0x704   :  { %v1688_v23 = vmul.f32 %v3397_v31, %v3397_v31  ;;  %v1927_v47 = vmul.f32 0.5, %v1923_v4 }
 0x706   :  { %v1690_v43 = vsel %vm150_vm0, %v1688_v23, 0.0  ;;  %v1931_v14 = vmul.f32 %v1927_v47, %v1892_v27 }
 0x707   :  { %1691 = vadd.xlane.f32.xlu0 %v1690_v43  ;;  %v1725_v43 = vpop.permute.xlu2 %1724 }
 0x708   :  { %v1894_v36 = vpop.f32.mrf.mxu3  ;;  %1975 = vmatmul.f32.gmra.mxu1 %v1931_v14 }
 0x709   :  { %v1895_v41 = vadd.f32 %v2193_v24, %v1894_v36 }
 0x70b   :  { %v1900_v52 = vmul.f32 %v1895_v41, %v1895_v41 }
 0x70d   :  { %v1904_v22 = vmul.f32 %v1900_v52, %v1895_v41 }
 0x70f   :  { %v1908_v44 = vmul.f32 0.044715, %v1904_v22 }
 0x711   :  { %v1912_v48 = vadd.f32 %v1908_v44, %v1895_v41 }
 0x713   :  { %v1916_v56 = vmul.f32 0.7978846, %v1912_v48 }
 0x715   :  { %2323 = vtanh.f32 %v1916_v56 }
 0x71b   :  { %v2324_v35 = vpop.eup %2323  ;;  %1984 = vrot.lane.b32.xlu0 %v2704_v50, %s2391_s3  ;;  %v2194_v50 = vld [vmem:[%s3454_s12] ss:$0 sm:$0xff]  ;;  %s2017_s12 = sshll.u32 %s2395_s11, 4  ;;  %s2018_s12 = int_to_ptr.vmem [resolvable:$true] %s2017_s12 }
 0x71c   :  { %v1924_v42 = vadd.f32 1.0, %v2324_v35 }
 0x71e   :  { %v1928_v49 = vmul.f32 0.5, %v1924_v42 }
 0x720   :  { %v1932_v54 = vmul.f32 %v1928_v49, %v1895_v41 }
 0x722   :  { %1978 = vmatmul.f32.gmra.mxu1 %v1932_v54 }
 0x73a   :  { %v1683_v59 = vpop.xlane.xlu1 %1682 }
 0x73b   :  { %v1685_v53 = vmul.f32 %v1683_v59, %v2515_v34 }
 0x73d   :  { %v3406_v8 = vsub.f32 %v3388_v3, %v1685_v53 }
 0x73f   :  { %v1689_v24 = vmul.f32 %v3406_v8, %v3406_v8 }
 0x741   :  { %v1693_v40 = vsel %vm150_vm0, %v1689_v24, 0.0 }
 0x742   :  { %1694 = vadd.xlane.f32.xlu1 %v1693_v40 }
 0x75b   :  { %1722 = vrot.lane.b32.xlu1 %v2655_v10, %s2388_s17 }
 0x760   :  { %v1970_v63 = vpop.f32.mrf.mxu1 }
 0x761   :  { %v1971_v58 = vadd.f32 %v2194_v50, %v1970_v63 }
 0x763   :  { %1982 = vrot.lane.b32.xlu1 %v2662_v13, %s2391_s3 }
 0x768   :  { %v1973_v3 = vpop.f32.mrf.mxu1 }
 0x769   :  { %v1974_v19 = vadd.f32 %v2194_v50, %v1973_v3 }
 0x76b   :  { %1730 = vrot.lane.b32.xlu1 %v2562_v2, %s2394_s16 }
 0x773   :  { %1732 = vrot.lane.b32.xlu1 %v2657_v11, %s2394_s16  ;;  %s2019_s16 = sshll.u32 %s3456_s14, 4  ;;  %s2397_s14 = smov 8   ;;  %s2020_s16 = int_to_ptr.hbm [resolvable:$true] %s2019_s16 }
 0x77a   :  { %v1692_v5 = vpop.xlane.xlu0 %1691 }
 0x77b   :  { %v1696_v2 = vmul.f32 %v1692_v5, %v2515_v34 }
 0x77d   :  { %v1698_v11 = vadd.f32 1e-05, %v1696_v2 }
 0x77f   :  { %2325 = vrsqrt.f32 %v1698_v11  ;;  %vm1706_vm12 = vweird.f32 %v1698_v11 }
 0x785   :  { %v1976_v17 = vpop.f32.mrf.mxu1  ;;  %v2326_v39 = vpop.eup %2325 }
 0x786   :  { %v1977_v10 = vadd.f32 %v2194_v50, %v1976_v17  ;;  %vm1707_vm11 = vweird.f32 %v2326_v39 }
 0x787   :  { %vm1708_vm13 = vmor %vm1706_vm12, %vm1707_vm11 }
 0x78d   :  { %v1985_v30 = vpop.permute.xlu0 %1984 }
 0x78e   :  { %v1990_v9 = vmul.f32 %v1985_v30, %v1977_v10 }
 0x790   :  { %v1994_v62 = vadd.f32 %v1990_v9, %v3205_v61  ;;  %v1701_v61 = vmul.f32 %v2326_v39, %v1698_v11 }
 0x792   :  { %1998 = vst.msk [vmem:[#allocation4 + $0x10] sm:$0xff] %vm150_vm0, %v1994_v62  ;;  %v1702_v12 = vmul.f32 %v2326_v39, %v1701_v61 }
 0x794   :  { %v1703_v21 = vmul.f32 0.5, %v1702_v12 }
 0x79f   :  { %v1979_v1 = vpop.f32.mrf.mxu1 }
 0x7a0   :  { %v1980_v55 = vadd.f32 %v2194_v50, %v1979_v1 }
 0x7a2   :  { %v1991_v13 = vmul.f32 %v1985_v30, %v1980_v55 }
 0x7a4   :  { %v1995_v7 = vadd.f32 %v1991_v13, %v3212_v45  ;;  %v1704_v45 = vsub.f32 1.5, %v1703_v21 }
 0x7a6   :  { %1999 = vst.msk [vmem:[#allocation4 + $0x18] sm:$0xff] %vm150_vm0, %v1995_v7  ;;  %v1705_v27 = vmul.f32 %v2326_v39, %v1704_v45 }
 0x7a8   :  { %v1709_v38 = vsel %vm1708_vm13, %v2326_v39, %v1705_v27 }
 0x7a9   :  { %v1720_v33 = vmul.f32 %v1709_v38, %v3397_v31 }
 0x7b5   :  { %v1695_v29 = vpop.xlane.xlu1 %1694 }
 0x7b6   :  { %v1697_v15 = vmul.f32 %v1695_v29, %v2515_v34 }
 0x7b8   :  { %v1699_v20 = vadd.f32 1e-05, %v1697_v15 }
 0x7ba   :  { %2327 = vrsqrt.f32 %v1699_v20  ;;  %vm1716_vm15 = vweird.f32 %v1699_v20 }
 0x7c0   :  { %v2328_v18 = vpop.eup %2327 }
 0x7c1   :  { %v1711_v6 = vmul.f32 %v2328_v18, %v1699_v20  ;;  %vm1717_vm14 = vweird.f32 %v2328_v18 }
 0x7c2   :  { %vm1718_vm1 = vmor %vm1716_vm15, %vm1717_vm14 }
 0x7c3   :  { %v1712_v25 = vmul.f32 %v2328_v18, %v1711_v6 }
 0x7c5   :  { %v1713_v26 = vmul.f32 0.5, %v1712_v25 }
 0x7c7   :  { %v1714_v16 = vsub.f32 1.5, %v1713_v26 }
 0x7c9   :  { %v1715_v60 = vmul.f32 %v2328_v18, %v1714_v16 }
 0x7cd   :  { %v1723_v37 = vpop.permute.xlu1 %1722 }
 0x7ce   :  { %v1728_v4 = vmul.f32 %v1723_v37, %v1720_v33 }
 0x7d5   :  { %v1983_v28 = vpop.permute.xlu1 %1982 }
 0x7d6   :  { %v1988_v34 = vmul.f32 %v1983_v28, %v1971_v58  ;;  %v1989_v0 = vmul.f32 %v1983_v28, %v1974_v19 }
 0x7d8   :  { %v1992_v51 = vadd.f32 %v1988_v34, %v3189_v57  ;;  %v1993_v46 = vadd.f32 %v1989_v0, %v3197_v32  ;;  %v1719_v57 = vsel %vm1718_vm1, %v2328_v18, %v1715_v60 }
 0x7d9   :  { %v1721_v32 = vmul.f32 %v1719_v57, %v3406_v8 }
 0x7da   :  { %1996 = vst.msk [vmem:[#allocation4] sm:$0xff] %vm150_vm0, %v1992_v51 }
 0x7db   :  { %1997 = vst.msk [vmem:[#allocation4 + $0x8] sm:$0xff] %vm150_vm0, %v1993_v46  ;;  %v1729_v31 = vmul.f32 %v1725_v43, %v1721_v32 }
 0x7dc   :  { %2025 = dma.vmem_to_hbm [thread:$0]  %s2018_s12, 512, %s2020_s16, [#allocation5], %s2396_s21, %s2396_s21, %s2397_s14  }
 0x7dd   :  { %v1731_v23 = vpop.permute.xlu1 %1730 }
 0x7de   :  { %v1736_v47 = vadd.f32 %v1731_v23, %v1728_v4 }
 0x7e0   :  { %1846 = vst.msk [vmem:[#allocation2] sm:$0xff] %vm150_vm0, %v1736_v47 }
 0x7e5   :  { %v1733_v14 = vpop.permute.xlu1 %1732 }
 0x7e6   :  { %v1737_v36 = vadd.f32 %v1733_v14, %v1729_v31 }
 0x7e8   :  { %1847 = vst.msk [vmem:[#allocation2 + $0x8] sm:$0xff] %vm150_vm0, %v1737_v36 }
 0x7e9   :  { %2012 = dma.vmem_to_hbm [thread:$0]  %s2005_s5, 256, %s2007_s6, [#allocation3], %s2396_s21, %s2396_s21, %s2397_s14  }
 0x7ea   :  { %2383 = dma.done.wait [#allocation3], 256  }
 0x7eb   :  { %2384 = vsyncadd [#allocation3], 4294967040 }
 0x7ec   :  { %2385 = dma.done.wait [#allocation5], 512  }
 0x7ed   :  { %2386 = vsyncadd [#allocation5], 4294966784 }
 0x7ee   :  { %2034 = vsyncpa [#allocation3], 1 }
 0x7ef   :  { %2035 = vsyncpa [#allocation5], 1 }

</bundles_post_ra>
